<compile_context>
chip_gen: v7x
topology: tpu7x:2x2x1
jax: 0.10.0
libtpu: 0.0.40
codegen_flags: <defaults>
</compile_context>

<pallas_src>
import functools
import numpy as np
import jax
import jax.numpy as jnp
from jax.experimental import pallas as pl
from jax.experimental.pallas import tpu as pltpu


# ----------------------------------------------------------------------------
# constant-matrix builders (host-side numpy; parameter-like setup, not hot path)
# ----------------------------------------------------------------------------
def _adaptive_pool_matrix(out_size, in_size):
    """1-D AdaptiveAvgPool weights (matches torch.nn.AdaptiveAvgPool semantics)."""
    M = np.zeros((out_size, in_size), np.float32)
    for i in range(out_size):
        s = (i * in_size) // out_size
        e = -((-(i + 1) * in_size) // out_size)  # ceil
        M[i, s:e] = 1.0 / (e - s)
    return M


def _interp_matrix(out_size, in_size):
    """1-D linear interpolation weights, align_corners=True (matches F.interpolate trilinear)."""
    M = np.zeros((out_size, in_size), np.float32)
    if out_size == 1 or in_size == 1:
        M[:, 0] = 1.0
        return M
    for o in range(out_size):
        t = o * (in_size - 1) / (out_size - 1)
        i0 = min(int(np.floor(t)), in_size - 1)
        frac = t - i0
        M[o, i0] += 1.0 - frac
        if frac > 0.0:
            M[o, min(i0 + 1, in_size - 1)] += frac
    return M


def _sine_pos_embed(window_q, C, temperature=10000.0):
    """PositionEmbeddingSine3D (normalize=False); batch-independent, returns (Nq, C)."""
    Xq, Yq, Zq = window_q
    npf = C // 3
    nfs = (npf, npf, C - 2 * npf)
    ones = np.ones((Xq, Yq, Zq), np.float32)
    z_embed = np.cumsum(ones, axis=0)  # cumsum over dim 1 of (B, X, Y, Z)
    y_embed = np.cumsum(ones, axis=1)
    x_embed = np.cumsum(ones, axis=2)

    def enc(embed, nf):
        dim_t = np.arange(nf, dtype=np.float32)
        dim_t = temperature ** (2.0 * np.floor(dim_t / 2.0) / nf)
        p = embed[..., None] / dim_t
        return np.concatenate([np.sin(p[..., 0::2]), np.cos(p[..., 1::2])], axis=-1)

    pos = np.concatenate(
        [enc(z_embed, nfs[2]), enc(y_embed, nfs[1]), enc(x_embed, nfs[0])], axis=-1)
    return pos.reshape(-1, C).astype(np.float32)


def build_constants(X, Y, Z, window_q, C):
    P = np.kron(_adaptive_pool_matrix(window_q[0], X),
                np.kron(_adaptive_pool_matrix(window_q[1], Y),
                        _adaptive_pool_matrix(window_q[2], Z)))        # (Nq, XYZ)
    Wup = np.kron(_interp_matrix(X, window_q[0]),
                  np.kron(_interp_matrix(Y, window_q[1]),
                          _interp_matrix(Z, window_q[2])))             # (XYZ, Nq)
    pos = _sine_pos_embed(window_q, C)                                 # (Nq, C)
    return (jnp.asarray(P, jnp.float32),
            jnp.asarray(Wup, jnp.float32),
            jnp.asarray(pos, jnp.float32))


def _group_fold_matrix(C, groups, count):
    """(C, C) matrix M with M[i, j] = 1/count iff channels i and j share a GroupNorm group.
    M @ per-channel-sums == per-channel broadcast of the group mean."""
    cg = C // groups
    gid = np.arange(C) // cg
    return ((gid[:, None] == gid[None, :]).astype(np.float32) / float(count))


# ----------------------------------------------------------------------------
# fused Pallas kernel: one batch element per grid step, everything stays on-chip
# ----------------------------------------------------------------------------
def _cond_attention_kernel(
        x_ref, cond_ref, pt_ref, wupt_ref, pos_ref, gmat_ref,
        wq_ref, bq_ref, wkv_ref, bkv_ref,
        w1_ref, b1_ref, w2_ref, b2_ref, wc_ref, bc_ref,
        gamma_ref, beta_ref,
        out_ref, *, heads):
    f32 = jnp.float32

    x_t = x_ref[0]                                                     # (C, XYZ) f32

    # ---- AdaptiveAvgPool3d as a matmul: pooled (C, Nq) = x (C, XYZ) @ P^T ----
    pooled = jnp.dot(x_t, pt_ref[...], preferred_element_type=f32)

    # ---- sine positional embedding (query path only) + Q and fused K/V projections ----
    qin = pooled + pos_ref[...]                                        # (C, Nq)
    q = jnp.dot(wq_ref[...], qin, preferred_element_type=f32) + bq_ref[...]
    kv = jnp.dot(wkv_ref[...], cond_ref[0], preferred_element_type=f32) + bkv_ref[...]
    C = q.shape[0]
    k = kv[:C]                                                         # (C, Nk)
    v = kv[C:]                                                         # (C, Nk)

    # ---- multi-head cross attention (no 1/sqrt(dh) scale, matching the torch forward) ----
    dh = C // heads
    head_outs = []
    for h in range(heads):                                             # static unroll; heads is small
        sl = slice(h * dh, (h + 1) * dh)
        # scores (Nq, Nk) = q_h^T @ k_h
        s = jax.lax.dot_general(q[sl], k[sl], (((0,), (0,)), ((), ())),
                                preferred_element_type=f32)
        s = s - jnp.max(s, axis=-1, keepdims=True)
        p = jnp.exp(s)
        p = p * pl.reciprocal(jnp.sum(p, axis=-1, keepdims=True), approx=True)
        # out_h (dh, Nq) = v_h @ p^T
        head_outs.append(jax.lax.dot_general(
            v[sl], p, (((1,), (1,)), ((), ())), preferred_element_type=f32))
    # single full-width (C, Nq) value -> no narrow per-head stores anywhere
    attn_out = jnp.concatenate(head_outs, axis=0)

    # ---- q_s = q_s + attn ; q_s = q_s + Mlp(q_s)  (1x1x1 convs == per-voxel linears) ----
    qmid = pooled + attn_out
    h1 = jnp.dot(w1_ref[...], qmid, preferred_element_type=f32) + b1_ref[...]
    h1 = jnp.maximum(h1, 0.0)
    qmid = qmid + jnp.dot(w2_ref[...], h1, preferred_element_type=f32) + b2_ref[...]

    # ---- out_conv 1x1x1 first (pooled domain, cheap), then trilinear upsample (matmul).
    #      The two linear maps commute: Wc @ (qmid @ Wup^T) == (Wc @ qmid) @ Wup^T. ----
    t = jnp.dot(wc_ref[...], qmid, preferred_element_type=f32)         # (C, Nq)
    y = jnp.dot(t, wupt_ref[...], preferred_element_type=f32) + bc_ref[...]   # (C, XYZ)

    # ---- GroupNorm(groups): two per-channel lane reductions + tiny group-fold matmul ----
    s1 = jnp.sum(y, axis=-1, keepdims=True)                            # (C, 1) sum(y)
    s2 = jnp.sum(y * y, axis=-1, keepdims=True)                        # (C, 1) sum(y^2)
    mean = jnp.dot(gmat_ref[...], s1, preferred_element_type=f32)      # per-channel group mean
    ex2 = jnp.dot(gmat_ref[...], s2, preferred_element_type=f32)       # per-channel group E[y^2]
    inv = jax.lax.rsqrt(ex2 - mean * mean + 1e-5)
    # residual with shortcut + per-channel affine; one full-width (C, XYZ) store
    out_ref[0] = x_t + (y - mean) * (inv * gamma_ref[...]) + beta_ref[...]


# ----------------------------------------------------------------------------
# wrapper
# ----------------------------------------------------------------------------
def cond_attention_forward(x, cond, params, *, heads, window_q, groups):
    B, C, X, Y, Z = x.shape
    XYZ = X * Y * Z
    Nq = window_q[0] * window_q[1] * window_q[2]
    Bc, Nk, _ = cond.shape

    f32 = jnp.float32

    # channels-first, lane-dense; pure metadata reshape (no HBM transpose)
    x_t = x.reshape(B, C, XYZ)                                         # (B, C, XYZ)
    cond_t = jnp.transpose(cond, (0, 2, 1))                            # (Bc, C, Nk), tiny

    P, Wup, pos = build_constants(X, Y, Z, window_q, C)
    pt = P.T                                                           # (XYZ, Nq)
    wupt = Wup.T                                                       # (Nq, XYZ)
    pos_t = pos.T                                                      # (C, Nq)
    gmat = jnp.asarray(_group_fold_matrix(C, groups, (C // groups) * XYZ), f32)

    tr = lambda w: w.T                                                 # (din,dout) -> (dout,din)
    col = lambda b: b.T                                                # (1,d) -> (d,1)
    wkv = jnp.concatenate([tr(params['wk']), tr(params['wv'])], axis=0)   # (2C, C)
    bkv = jnp.concatenate([col(params['bk']), col(params['bv'])], axis=0)  # (2C, 1)

    shared2 = lambda s: pl.BlockSpec(s, lambda b: (0, 0))
    per_b3 = pl.BlockSpec((1, C, XYZ), lambda b: (b, 0, 0))
    cond_spec = pl.BlockSpec(
        (1, C, Nk), (lambda b: (b, 0, 0)) if Bc == B else (lambda b: (0, 0, 0)))

    out_t = pl.pallas_call(
        functools.partial(_cond_attention_kernel, heads=heads),
        grid=(B,),
        in_specs=[per_b3, cond_spec,
                  shared2((XYZ, Nq)), shared2((Nq, XYZ)), shared2((C, Nq)), shared2((C, C)),
                  shared2((C, C)), shared2((C, 1)),
                  shared2((2 * C, C)), shared2((2 * C, 1)),
                  shared2((2 * C, C)), shared2((2 * C, 1)),
                  shared2((C, 2 * C)), shared2((C, 1)),
                  shared2((C, C)), shared2((C, 1)),
                  shared2((C, 1)), shared2((C, 1))],
        out_specs=per_b3,
        out_shape=jax.ShapeDtypeStruct((B, C, XYZ), f32),
        input_output_aliases={0: 0},            # out = shortcut + residual, same shape/dtype as x
        compiler_params=pltpu.CompilerParams(dimension_semantics=("parallel",)),
    )(x_t, cond_t, pt, wupt, pos_t, gmat,
      tr(params['wq']), col(params['bq']),
      wkv, bkv,
      tr(params['w1']), col(params['b1']),
      tr(params['w2']), col(params['b2']),
      tr(params['wc']), col(params['bc']),
      col(params['gamma']), col(params['beta']))

    return out_t.reshape(B, C, X, Y, Z)


# ----------------------------------------------------------------------------
# plain-JAX reference (channels-last, f32) for a sanity check of the Pallas translation
# ----------------------------------------------------------------------------
def reference_forward(x, cond, params, *, heads, window_q, groups):
    B, C, X, Y, Z = x.shape
    XYZ = X * Y * Z
    Nq = window_q[0] * window_q[1] * window_q[2]
    cond_b = jnp.broadcast_to(cond, (B,) + cond.shape[1:])
    x_flat = jnp.transpose(x.reshape(B, C, XYZ), (0, 2, 1))
    P, Wup, pos = build_constants(X, Y, Z, window_q, C)
    dh = C // heads

    pooled = jnp.einsum('qm,bmc->bqc', P, x_flat)
    qin = pooled + pos[None]
    q = qin @ params['wq'] + params['bq']
    k = cond_b @ params['wk'] + params['bk']
    v = cond_b @ params['wv'] + params['bv']
    qh = q.reshape(B, Nq, heads, dh).transpose(0, 2, 1, 3)
    kh = k.reshape(B, -1, heads, dh).transpose(0, 2, 1, 3)
    vh = v.reshape(B, -1, heads, dh).transpose(0, 2, 1, 3)
    attn = jax.nn.softmax(jnp.einsum('bhqd,bhkd->bhqk', qh, kh), axis=-1)
    o = jnp.einsum('bhqk,bhkd->bhqd', attn, vh).transpose(0, 2, 1, 3).reshape(B, Nq, C)

    qmid = pooled + o
    h = jnp.maximum(qmid @ params['w1'] + params['b1'], 0.0)
    qmid = qmid + h @ params['w2'] + params['b2']

    up = jnp.einsum('mq,bqc->bmc', Wup, qmid)
    y = up @ params['wc'] + params['bc']
    yr = y.reshape(B, XYZ, groups, C // groups)
    m = yr.mean(axis=(1, 3), keepdims=True)
    var = ((yr - m) ** 2).mean(axis=(1, 3), keepdims=True)
    yn = ((yr - m) / jnp.sqrt(var + 1e-5)).reshape(B, XYZ, C)
    out_flat = x_flat + yn * params['gamma'] + params['beta']
    return jnp.transpose(out_flat, (0, 2, 1)).reshape(B, C, X, Y, Z)


# ----------------------------------------------------------------------------
# deterministic parameter init (synthetic; weights stored as y = x @ W + b)
# ----------------------------------------------------------------------------
def init_params(key, C, scale=0.1):
    ks = jax.random.split(key, 8)

    def lin(k, din, dout):
        kw, kb = jax.random.split(k)
        return (scale * jax.random.normal(kw, (din, dout), jnp.float32),
                scale * jax.random.normal(kb, (1, dout), jnp.float32))

    wq, bq = lin(ks[0], C, C)
    wk, bk = lin(ks[1], C, C)
    wv, bv = lin(ks[2], C, C)
    w1, b1 = lin(ks[3], C, 2 * C)      # Mlp.fc1 (Conv3d 1x1x1)
    w2, b2 = lin(ks[4], 2 * C, C)      # Mlp.fc2 (Conv3d 1x1x1)
    wc, bc = lin(ks[5], C, C)          # out_conv[0] (Conv3d 1x1x1)
    gamma = 1.0 + 0.05 * jax.random.normal(ks[6], (1, C), jnp.float32)   # GroupNorm affine
    beta = 0.05 * jax.random.normal(ks[7], (1, C), jnp.float32)
    return dict(wq=wq, bq=bq, wk=wk, bk=bk, wv=wv, bv=bv,
                w1=w1, b1=b1, w2=w2, b2=b2, wc=wc, bc=bc,
                gamma=gamma, beta=beta)


if __name__ == "__main__":
    B, C, X, Y, Z = 2, 16, 8, 8, 8       # dim = C = 16, heads = 4 -> dim_head = 4
    heads, groups = 4, 8
    window_q = (4, 4, 4)
    Nk = 10                              # number of condition tokens

    key = jax.random.PRNGKey(0)
    k_x, k_cond, k_p = jax.random.split(key, 3)
    x = jax.random.normal(k_x, (B, C, X, Y, Z), jnp.float32)
    cond = jax.random.normal(k_cond, (1, Nk, C), jnp.float32)   # batch-1 cond, resident in VMEM

    params = init_params(k_p, C)

    # reference first (plain JAX, full f32)
    with jax.default_matmul_precision('float32'):
        ref = reference_forward(x, cond, params, heads=heads, window_q=window_q, groups=groups)
    ref = jax.block_until_ready(ref)

    fwd = jax.jit(functools.partial(cond_attention_forward,
                                    heads=heads, window_q=window_q, groups=groups))
    out = jax.block_until_ready(fwd(x, cond, params))

    assert out.shape == (B, C, X, Y, Z)
    assert np.isfinite(np.asarray(out)).all()
    max_diff = float(jnp.max(jnp.abs(out - ref)))
    assert max_diff < 1e-1, f"max abs diff vs reference: {max_diff}"
    print("KERNEL_OK")
</pallas_src>

<mosaic_0001>
module attributes {stable_mosaic.version = 11 : i64} {
  func.func @_cond_attention_kernel(%arg0: i32, %arg1: memref<1x16x512xf32, #tpu.memory_space<vmem>>, %arg2: memref<1x16x10xf32, #tpu.memory_space<vmem>>, %arg3: memref<512x64xf32, #tpu.memory_space<vmem>>, %arg4: memref<64x512xf32, #tpu.memory_space<vmem>>, %arg5: memref<16x64xf32, #tpu.memory_space<vmem>>, %arg6: memref<16x16xf32, #tpu.memory_space<vmem>>, %arg7: memref<16x16xf32, #tpu.memory_space<vmem>>, %arg8: memref<16x1xf32, #tpu.memory_space<vmem>>, %arg9: memref<32x16xf32, #tpu.memory_space<vmem>>, %arg10: memref<32x1xf32, #tpu.memory_space<vmem>>, %arg11: memref<32x16xf32, #tpu.memory_space<vmem>>, %arg12: memref<32x1xf32, #tpu.memory_space<vmem>>, %arg13: memref<16x32xf32, #tpu.memory_space<vmem>>, %arg14: memref<16x1xf32, #tpu.memory_space<vmem>>, %arg15: memref<16x16xf32, #tpu.memory_space<vmem>>, %arg16: memref<16x1xf32, #tpu.memory_space<vmem>>, %arg17: memref<16x1xf32, #tpu.memory_space<vmem>>, %arg18: memref<16x1xf32, #tpu.memory_space<vmem>>, %arg19: memref<1x16x512xf32, #tpu.memory_space<vmem>>) attributes {dimension_semantics = [#tpu.dimension_semantics<parallel>], iteration_bounds = array<i64: 2>, scalar_prefetch = 0 : i64, scratch_operands = 0 : i64, tpu.core_type = #tpu.core_type<tc>, window_params = [{transform_indices = @transform_0, window_bounds = array<i64: 1, 16, 512>}, {pipeline_mode = #tpu.pipeline_mode<synchronous>, transform_indices = @transform_1, window_bounds = array<i64: 1, 16, 10>}, {pipeline_mode = #tpu.pipeline_mode<synchronous>, transform_indices = @transform_2, window_bounds = array<i64: 512, 64>}, {pipeline_mode = #tpu.pipeline_mode<synchronous>, transform_indices = @transform_3, window_bounds = array<i64: 64, 512>}, {pipeline_mode = #tpu.pipeline_mode<synchronous>, transform_indices = @transform_4, window_bounds = array<i64: 16, 64>}, {pipeline_mode = #tpu.pipeline_mode<synchronous>, transform_indices = @transform_5, window_bounds = array<i64: 16, 16>}, {pipeline_mode = #tpu.pipeline_mode<synchronous>, transform_indices = @transform_6, window_bounds = array<i64: 16, 16>}, {pipeline_mode = #tpu.pipeline_mode<synchronous>, transform_indices = @transform_7, window_bounds = array<i64: 16, 1>}, {pipeline_mode = #tpu.pipeline_mode<synchronous>, transform_indices = @transform_8, window_bounds = array<i64: 32, 16>}, {pipeline_mode = #tpu.pipeline_mode<synchronous>, transform_indices = @transform_9, window_bounds = array<i64: 32, 1>}, {pipeline_mode = #tpu.pipeline_mode<synchronous>, transform_indices = @transform_10, window_bounds = array<i64: 32, 16>}, {pipeline_mode = #tpu.pipeline_mode<synchronous>, transform_indices = @transform_11, window_bounds = array<i64: 32, 1>}, {pipeline_mode = #tpu.pipeline_mode<synchronous>, transform_indices = @transform_12, window_bounds = array<i64: 16, 32>}, {pipeline_mode = #tpu.pipeline_mode<synchronous>, transform_indices = @transform_13, window_bounds = array<i64: 16, 1>}, {pipeline_mode = #tpu.pipeline_mode<synchronous>, transform_indices = @transform_14, window_bounds = array<i64: 16, 16>}, {pipeline_mode = #tpu.pipeline_mode<synchronous>, transform_indices = @transform_15, window_bounds = array<i64: 16, 1>}, {pipeline_mode = #tpu.pipeline_mode<synchronous>, transform_indices = @transform_16, window_bounds = array<i64: 16, 1>}, {pipeline_mode = #tpu.pipeline_mode<synchronous>, transform_indices = @transform_17, window_bounds = array<i64: 16, 1>}, {transform_indices = @transform_18, window_bounds = array<i64: 1, 16, 512>}]} {
    %c0 = arith.constant 0 : index
    %c0_0 = arith.constant 0 : index
    %c0_1 = arith.constant 0 : index
    %0 = vector.load %arg1[%c0, %c0_0, %c0_1] : memref<1x16x512xf32, #tpu.memory_space<vmem>>, vector<1x16x512xf32>
    %1 = vector.shape_cast %0 : vector<1x16x512xf32> to vector<16x512xf32>
    %c0_2 = arith.constant 0 : index
    %c0_3 = arith.constant 0 : index
    %2 = vector.load %arg3[%c0_2, %c0_3] : memref<512x64xf32, #tpu.memory_space<vmem>>, vector<512x64xf32>
    %cst = arith.constant dense<0.000000e+00> : vector<16x64xf32>
    %3 = tpu.matmul %1, %2, %cst {dimension_numbers = #tpu.dot_dimension_numbers<[1], [0], [0], [1], [0, 0, 1, 1], [], []>} : vector<16x512xf32>, vector<512x64xf32>, vector<16x64xf32> -> vector<16x64xf32>
    %c0_4 = arith.constant 0 : index
    %c0_5 = arith.constant 0 : index
    %4 = vector.load %arg5[%c0_4, %c0_5] : memref<16x64xf32, #tpu.memory_space<vmem>>, vector<16x64xf32>
    %5 = arith.addf %3, %4 : vector<16x64xf32>
    %c0_6 = arith.constant 0 : index
    %c0_7 = arith.constant 0 : index
    %6 = vector.load %arg7[%c0_6, %c0_7] : memref<16x16xf32, #tpu.memory_space<vmem>>, vector<16x16xf32>
    %cst_8 = arith.constant dense<0.000000e+00> : vector<16x64xf32>
    %7 = tpu.matmul %6, %5, %cst_8 {dimension_numbers = #tpu.dot_dimension_numbers<[1], [0], [0], [1], [0, 0, 1, 1], [], []>} : vector<16x16xf32>, vector<16x64xf32>, vector<16x64xf32> -> vector<16x64xf32>
    %c0_9 = arith.constant 0 : index
    %c0_10 = arith.constant 0 : index
    %8 = vector.load %arg8[%c0_9, %c0_10] : memref<16x1xf32, #tpu.memory_space<vmem>>, vector<16x1xf32>
    %9 = vector.broadcast %8 : vector<16x1xf32> to vector<16x64xf32>
    %10 = arith.addf %7, %9 : vector<16x64xf32>
    %c0_11 = arith.constant 0 : index
    %c0_12 = arith.constant 0 : index
    %11 = vector.load %arg9[%c0_11, %c0_12] : memref<32x16xf32, #tpu.memory_space<vmem>>, vector<32x16xf32>
    %c0_13 = arith.constant 0 : index
    %c0_14 = arith.constant 0 : index
    %c0_15 = arith.constant 0 : index
    %12 = vector.load %arg2[%c0_13, %c0_14, %c0_15] : memref<1x16x10xf32, #tpu.memory_space<vmem>>, vector<1x16x10xf32>
    %13 = vector.shape_cast %12 : vector<1x16x10xf32> to vector<16x10xf32>
    %cst_16 = arith.constant dense<0.000000e+00> : vector<32x10xf32>
    %14 = tpu.matmul %11, %13, %cst_16 {dimension_numbers = #tpu.dot_dimension_numbers<[1], [0], [0], [1], [0, 0, 1, 1], [], []>} : vector<32x16xf32>, vector<16x10xf32>, vector<32x10xf32> -> vector<32x10xf32>
    %c0_17 = arith.constant 0 : index
    %c0_18 = arith.constant 0 : index
    %15 = vector.load %arg10[%c0_17, %c0_18] : memref<32x1xf32, #tpu.memory_space<vmem>>, vector<32x1xf32>
    %16 = vector.broadcast %15 : vector<32x1xf32> to vector<32x10xf32>
    %17 = arith.addf %14, %16 : vector<32x10xf32>
    %18 = vector.extract_strided_slice %17 {offsets = [0, 0], sizes = [16, 10], strides = [1, 1]} : vector<32x10xf32> to vector<16x10xf32>
    %19 = vector.extract_strided_slice %17 {offsets = [16, 0], sizes = [16, 10], strides = [1, 1]} : vector<32x10xf32> to vector<16x10xf32>
    %20 = vector.extract_strided_slice %10 {offsets = [0, 0], sizes = [4, 64], strides = [1, 1]} : vector<16x64xf32> to vector<4x64xf32>
    %21 = vector.extract_strided_slice %18 {offsets = [0, 0], sizes = [4, 10], strides = [1, 1]} : vector<16x10xf32> to vector<4x10xf32>
    %cst_19 = arith.constant dense<0.000000e+00> : vector<64x10xf32>
    %22 = tpu.matmul %20, %21, %cst_19 {dimension_numbers = #tpu.dot_dimension_numbers<[0], [0], [1], [1], [0, 1, 1, 1], [], []>} : vector<4x64xf32>, vector<4x10xf32>, vector<64x10xf32> -> vector<64x10xf32>
    %cst_20 = arith.constant dense<0xFF800000> : vector<64xf32>
    %23 = vector.multi_reduction <maximumf>, %22, %cst_20 [1] : vector<64x10xf32> to vector<64xf32>
    %24 = vector.shape_cast %23 : vector<64xf32> to vector<64x1xf32>
    %25 = vector.broadcast %24 : vector<64x1xf32> to vector<64x10xf32>
    %26 = arith.subf %22, %25 : vector<64x10xf32>
    %27 = math.exp %26 : vector<64x10xf32>
    %cst_21 = arith.constant dense<0.000000e+00> : vector<64xf32>
    %28 = vector.multi_reduction <add>, %27, %cst_21 [1] : vector<64x10xf32> to vector<64xf32>
    %29 = vector.shape_cast %28 : vector<64xf32> to vector<64x1xf32>
    %30 = tpu.reciprocal %29 {approx = true} : vector<64x1xf32> -> vector<64x1xf32>
    %31 = vector.broadcast %30 : vector<64x1xf32> to vector<64x10xf32>
    %32 = arith.mulf %27, %31 : vector<64x10xf32>
    %33 = vector.extract_strided_slice %19 {offsets = [0, 0], sizes = [4, 10], strides = [1, 1]} : vector<16x10xf32> to vector<4x10xf32>
    %cst_22 = arith.constant dense<0.000000e+00> : vector<4x64xf32>
    %34 = tpu.matmul %33, %32, %cst_22 {dimension_numbers = #tpu.dot_dimension_numbers<[1], [1], [0], [0], [0, 0, 1, 0], [], []>} : vector<4x10xf32>, vector<64x10xf32>, vector<4x64xf32> -> vector<4x64xf32>
    %35 = vector.extract_strided_slice %10 {offsets = [4, 0], sizes = [4, 64], strides = [1, 1]} : vector<16x64xf32> to vector<4x64xf32>
    %36 = vector.extract_strided_slice %18 {offsets = [4, 0], sizes = [4, 10], strides = [1, 1]} : vector<16x10xf32> to vector<4x10xf32>
    %cst_23 = arith.constant dense<0.000000e+00> : vector<64x10xf32>
    %37 = tpu.matmul %35, %36, %cst_23 {dimension_numbers = #tpu.dot_dimension_numbers<[0], [0], [1], [1], [0, 1, 1, 1], [], []>} : vector<4x64xf32>, vector<4x10xf32>, vector<64x10xf32> -> vector<64x10xf32>
    %cst_24 = arith.constant dense<0xFF800000> : vector<64xf32>
    %38 = vector.multi_reduction <maximumf>, %37, %cst_24 [1] : vector<64x10xf32> to vector<64xf32>
    %39 = vector.shape_cast %38 : vector<64xf32> to vector<64x1xf32>
    %40 = vector.broadcast %39 : vector<64x1xf32> to vector<64x10xf32>
    %41 = arith.subf %37, %40 : vector<64x10xf32>
    %42 = math.exp %41 : vector<64x10xf32>
    %cst_25 = arith.constant dense<0.000000e+00> : vector<64xf32>
    %43 = vector.multi_reduction <add>, %42, %cst_25 [1] : vector<64x10xf32> to vector<64xf32>
    %44 = vector.shape_cast %43 : vector<64xf32> to vector<64x1xf32>
    %45 = tpu.reciprocal %44 {approx = true} : vector<64x1xf32> -> vector<64x1xf32>
    %46 = vector.broadcast %45 : vector<64x1xf32> to vector<64x10xf32>
    %47 = arith.mulf %42, %46 : vector<64x10xf32>
    %48 = vector.extract_strided_slice %19 {offsets = [4, 0], sizes = [4, 10], strides = [1, 1]} : vector<16x10xf32> to vector<4x10xf32>
    %cst_26 = arith.constant dense<0.000000e+00> : vector<4x64xf32>
    %49 = tpu.matmul %48, %47, %cst_26 {dimension_numbers = #tpu.dot_dimension_numbers<[1], [1], [0], [0], [0, 0, 1, 0], [], []>} : vector<4x10xf32>, vector<64x10xf32>, vector<4x64xf32> -> vector<4x64xf32>
    %50 = vector.extract_strided_slice %10 {offsets = [8, 0], sizes = [4, 64], strides = [1, 1]} : vector<16x64xf32> to vector<4x64xf32>
    %51 = vector.extract_strided_slice %18 {offsets = [8, 0], sizes = [4, 10], strides = [1, 1]} : vector<16x10xf32> to vector<4x10xf32>
    %cst_27 = arith.constant dense<0.000000e+00> : vector<64x10xf32>
    %52 = tpu.matmul %50, %51, %cst_27 {dimension_numbers = #tpu.dot_dimension_numbers<[0], [0], [1], [1], [0, 1, 1, 1], [], []>} : vector<4x64xf32>, vector<4x10xf32>, vector<64x10xf32> -> vector<64x10xf32>
    %cst_28 = arith.constant dense<0xFF800000> : vector<64xf32>
    %53 = vector.multi_reduction <maximumf>, %52, %cst_28 [1] : vector<64x10xf32> to vector<64xf32>
    %54 = vector.shape_cast %53 : vector<64xf32> to vector<64x1xf32>
    %55 = vector.broadcast %54 : vector<64x1xf32> to vector<64x10xf32>
    %56 = arith.subf %52, %55 : vector<64x10xf32>
    %57 = math.exp %56 : vector<64x10xf32>
    %cst_29 = arith.constant dense<0.000000e+00> : vector<64xf32>
    %58 = vector.multi_reduction <add>, %57, %cst_29 [1] : vector<64x10xf32> to vector<64xf32>
    %59 = vector.shape_cast %58 : vector<64xf32> to vector<64x1xf32>
    %60 = tpu.reciprocal %59 {approx = true} : vector<64x1xf32> -> vector<64x1xf32>
    %61 = vector.broadcast %60 : vector<64x1xf32> to vector<64x10xf32>
    %62 = arith.mulf %57, %61 : vector<64x10xf32>
    %63 = vector.extract_strided_slice %19 {offsets = [8, 0], sizes = [4, 10], strides = [1, 1]} : vector<16x10xf32> to vector<4x10xf32>
    %cst_30 = arith.constant dense<0.000000e+00> : vector<4x64xf32>
    %64 = tpu.matmul %63, %62, %cst_30 {dimension_numbers = #tpu.dot_dimension_numbers<[1], [1], [0], [0], [0, 0, 1, 0], [], []>} : vector<4x10xf32>, vector<64x10xf32>, vector<4x64xf32> -> vector<4x64xf32>
    %65 = vector.extract_strided_slice %10 {offsets = [12, 0], sizes = [4, 64], strides = [1, 1]} : vector<16x64xf32> to vector<4x64xf32>
    %66 = vector.extract_strided_slice %18 {offsets = [12, 0], sizes = [4, 10], strides = [1, 1]} : vector<16x10xf32> to vector<4x10xf32>
    %cst_31 = arith.constant dense<0.000000e+00> : vector<64x10xf32>
    %67 = tpu.matmul %65, %66, %cst_31 {dimension_numbers = #tpu.dot_dimension_numbers<[0], [0], [1], [1], [0, 1, 1, 1], [], []>} : vector<4x64xf32>, vector<4x10xf32>, vector<64x10xf32> -> vector<64x10xf32>
    %cst_32 = arith.constant dense<0xFF800000> : vector<64xf32>
    %68 = vector.multi_reduction <maximumf>, %67, %cst_32 [1] : vector<64x10xf32> to vector<64xf32>
    %69 = vector.shape_cast %68 : vector<64xf32> to vector<64x1xf32>
    %70 = vector.broadcast %69 : vector<64x1xf32> to vector<64x10xf32>
    %71 = arith.subf %67, %70 : vector<64x10xf32>
    %72 = math.exp %71 : vector<64x10xf32>
    %cst_33 = arith.constant dense<0.000000e+00> : vector<64xf32>
    %73 = vector.multi_reduction <add>, %72, %cst_33 [1] : vector<64x10xf32> to vector<64xf32>
    %74 = vector.shape_cast %73 : vector<64xf32> to vector<64x1xf32>
    %75 = tpu.reciprocal %74 {approx = true} : vector<64x1xf32> -> vector<64x1xf32>
    %76 = vector.broadcast %75 : vector<64x1xf32> to vector<64x10xf32>
    %77 = arith.mulf %72, %76 : vector<64x10xf32>
    %78 = vector.extract_strided_slice %19 {offsets = [12, 0], sizes = [4, 10], strides = [1, 1]} : vector<16x10xf32> to vector<4x10xf32>
    %cst_34 = arith.constant dense<0.000000e+00> : vector<4x64xf32>
    %79 = tpu.matmul %78, %77, %cst_34 {dimension_numbers = #tpu.dot_dimension_numbers<[1], [1], [0], [0], [0, 0, 1, 0], [], []>} : vector<4x10xf32>, vector<64x10xf32>, vector<4x64xf32> -> vector<4x64xf32>
    %80 = tpu.concatenate %34, %49, %64, %79 in 0 : vector<4x64xf32>, vector<4x64xf32>, vector<4x64xf32>, vector<4x64xf32> -> vector<16x64xf32>
    %81 = arith.addf %3, %80 : vector<16x64xf32>
    %c0_35 = arith.constant 0 : index
    %c0_36 = arith.constant 0 : index
    %82 = vector.load %arg11[%c0_35, %c0_36] : memref<32x16xf32, #tpu.memory_space<vmem>>, vector<32x16xf32>
    %cst_37 = arith.constant dense<0.000000e+00> : vector<32x64xf32>
    %83 = tpu.matmul %82, %81, %cst_37 {dimension_numbers = #tpu.dot_dimension_numbers<[1], [0], [0], [1], [0, 0, 1, 1], [], []>} : vector<32x16xf32>, vector<16x64xf32>, vector<32x64xf32> -> vector<32x64xf32>
    %c0_38 = arith.constant 0 : index
    %c0_39 = arith.constant 0 : index
    %84 = vector.load %arg12[%c0_38, %c0_39] : memref<32x1xf32, #tpu.memory_space<vmem>>, vector<32x1xf32>
    %85 = vector.broadcast %84 : vector<32x1xf32> to vector<32x64xf32>
    %86 = arith.addf %83, %85 : vector<32x64xf32>
    %cst_40 = arith.constant 0.000000e+00 : f32
    %87 = vector.broadcast %cst_40 : f32 to vector<32x64xf32>
    %88 = arith.maximumf %86, %87 : vector<32x64xf32>
    %c0_41 = arith.constant 0 : index
    %c0_42 = arith.constant 0 : index
    %89 = vector.load %arg13[%c0_41, %c0_42] : memref<16x32xf32, #tpu.memory_space<vmem>>, vector<16x32xf32>
    %cst_43 = arith.constant dense<0.000000e+00> : vector<16x64xf32>
    %90 = tpu.matmul %89, %88, %cst_43 {dimension_numbers = #tpu.dot_dimension_numbers<[1], [0], [0], [1], [0, 0, 1, 1], [], []>} : vector<16x32xf32>, vector<32x64xf32>, vector<16x64xf32> -> vector<16x64xf32>
    %91 = arith.addf %81, %90 : vector<16x64xf32>
    %c0_44 = arith.constant 0 : index
    %c0_45 = arith.constant 0 : index
    %92 = vector.load %arg14[%c0_44, %c0_45] : memref<16x1xf32, #tpu.memory_space<vmem>>, vector<16x1xf32>
    %93 = vector.broadcast %92 : vector<16x1xf32> to vector<16x64xf32>
    %94 = arith.addf %91, %93 : vector<16x64xf32>
    %c0_46 = arith.constant 0 : index
    %c0_47 = arith.constant 0 : index
    %95 = vector.load %arg15[%c0_46, %c0_47] : memref<16x16xf32, #tpu.memory_space<vmem>>, vector<16x16xf32>
    %cst_48 = arith.constant dense<0.000000e+00> : vector<16x64xf32>
    %96 = tpu.matmul %95, %94, %cst_48 {dimension_numbers = #tpu.dot_dimension_numbers<[1], [0], [0], [1], [0, 0, 1, 1], [], []>} : vector<16x16xf32>, vector<16x64xf32>, vector<16x64xf32> -> vector<16x64xf32>
    %c0_49 = arith.constant 0 : index
    %c0_50 = arith.constant 0 : index
    %97 = vector.load %arg4[%c0_49, %c0_50] : memref<64x512xf32, #tpu.memory_space<vmem>>, vector<64x512xf32>
    %cst_51 = arith.constant dense<0.000000e+00> : vector<16x512xf32>
    %98 = tpu.matmul %96, %97, %cst_51 {dimension_numbers = #tpu.dot_dimension_numbers<[1], [0], [0], [1], [0, 0, 1, 1], [], []>} : vector<16x64xf32>, vector<64x512xf32>, vector<16x512xf32> -> vector<16x512xf32>
    %c0_52 = arith.constant 0 : index
    %c0_53 = arith.constant 0 : index
    %99 = vector.load %arg16[%c0_52, %c0_53] : memref<16x1xf32, #tpu.memory_space<vmem>>, vector<16x1xf32>
    %100 = vector.broadcast %99 : vector<16x1xf32> to vector<16x512xf32>
    %101 = arith.addf %98, %100 : vector<16x512xf32>
    %cst_54 = arith.constant dense<0.000000e+00> : vector<16xf32>
    %102 = vector.multi_reduction <add>, %101, %cst_54 [1] : vector<16x512xf32> to vector<16xf32>
    %103 = vector.shape_cast %102 : vector<16xf32> to vector<16x1xf32>
    %104 = arith.mulf %101, %101 : vector<16x512xf32>
    %cst_55 = arith.constant dense<0.000000e+00> : vector<16xf32>
    %105 = vector.multi_reduction <add>, %104, %cst_55 [1] : vector<16x512xf32> to vector<16xf32>
    %106 = vector.shape_cast %105 : vector<16xf32> to vector<16x1xf32>
    %c0_56 = arith.constant 0 : index
    %c0_57 = arith.constant 0 : index
    %107 = vector.load %arg6[%c0_56, %c0_57] : memref<16x16xf32, #tpu.memory_space<vmem>>, vector<16x16xf32>
    %cst_58 = arith.constant dense<0.000000e+00> : vector<16x1xf32>
    %108 = tpu.matmul %107, %103, %cst_58 {dimension_numbers = #tpu.dot_dimension_numbers<[1], [0], [0], [1], [0, 0, 1, 1], [], []>} : vector<16x16xf32>, vector<16x1xf32>, vector<16x1xf32> -> vector<16x1xf32>
    %c0_59 = arith.constant 0 : index
    %c0_60 = arith.constant 0 : index
    %109 = vector.load %arg6[%c0_59, %c0_60] : memref<16x16xf32, #tpu.memory_space<vmem>>, vector<16x16xf32>
    %cst_61 = arith.constant dense<0.000000e+00> : vector<16x1xf32>
    %110 = tpu.matmul %109, %106, %cst_61 {dimension_numbers = #tpu.dot_dimension_numbers<[1], [0], [0], [1], [0, 0, 1, 1], [], []>} : vector<16x16xf32>, vector<16x1xf32>, vector<16x1xf32> -> vector<16x1xf32>
    %111 = arith.mulf %108, %108 : vector<16x1xf32>
    %112 = arith.subf %110, %111 : vector<16x1xf32>
    %cst_62 = arith.constant 9.99999974E-6 : f32
    %113 = vector.broadcast %cst_62 : f32 to vector<16x1xf32>
    %114 = arith.addf %112, %113 : vector<16x1xf32>
    %115 = math.rsqrt %114 : vector<16x1xf32>
    %116 = vector.broadcast %108 : vector<16x1xf32> to vector<16x512xf32>
    %117 = arith.subf %101, %116 : vector<16x512xf32>
    %c0_63 = arith.constant 0 : index
    %c0_64 = arith.constant 0 : index
    %118 = vector.load %arg17[%c0_63, %c0_64] : memref<16x1xf32, #tpu.memory_space<vmem>>, vector<16x1xf32>
    %119 = arith.mulf %115, %118 : vector<16x1xf32>
    %120 = vector.broadcast %119 : vector<16x1xf32> to vector<16x512xf32>
    %121 = arith.mulf %117, %120 : vector<16x512xf32>
    %122 = arith.addf %1, %121 : vector<16x512xf32>
    %c0_65 = arith.constant 0 : index
    %c0_66 = arith.constant 0 : index
    %123 = vector.load %arg18[%c0_65, %c0_66] : memref<16x1xf32, #tpu.memory_space<vmem>>, vector<16x1xf32>
    %124 = vector.broadcast %123 : vector<16x1xf32> to vector<16x512xf32>
    %125 = arith.addf %122, %124 : vector<16x512xf32>
    %c0_67 = arith.constant 0 : index
    %c0_68 = arith.constant 0 : index
    %c0_69 = arith.constant 0 : index
    %126 = vector.load %arg19[%c0_67, %c0_68, %c0_69] : memref<1x16x512xf32, #tpu.memory_space<vmem>>, vector<1x16x512xf32>
    %127 = vector.shape_cast %126 : vector<1x16x512xf32> to vector<16x512xf32>
    %128 = vector.shape_cast %125 : vector<16x512xf32> to vector<1x16x512xf32>
    tpu.vector_store %arg19[%c0_67, %c0_68, %c0_69], %128 {strides = array<i32>} : memref<1x16x512xf32, #tpu.memory_space<vmem>>, vector<1x16x512xf32>,
    return
  }
  func.func @transform_0(%arg0: i32) -> (i32, i32, i32) {
    %c0_i32 = arith.constant 0 : i32
    %c0_i32_0 = arith.constant 0 : i32
    %c0_i32_1 = arith.constant 0 : i32
    return %arg0, %c0_i32, %c0_i32_0 : i32, i32, i32
  }
  func.func @transform_1(%arg0: i32) -> (i32, i32, i32) {
    %c0_i32 = arith.constant 0 : i32
    %c0_i32_0 = arith.constant 0 : i32
    %c0_i32_1 = arith.constant 0 : i32
    %c0_i32_2 = arith.constant 0 : i32
    return %c0_i32, %c0_i32_0, %c0_i32_1 : i32, i32, i32
  }
  func.func @transform_2(%arg0: i32) -> (i32, i32) {
    %c0_i32 = arith.constant 0 : i32
    %c0_i32_0 = arith.constant 0 : i32
    %c0_i32_1 = arith.constant 0 : i32
    return %c0_i32, %c0_i32_0 : i32, i32
  }
  func.func @transform_3(%arg0: i32) -> (i32, i32) {
    %c0_i32 = arith.constant 0 : i32
    %c0_i32_0 = arith.constant 0 : i32
    %c0_i32_1 = arith.constant 0 : i32
    return %c0_i32, %c0_i32_0 : i32, i32
  }
  func.func @transform_4(%arg0: i32) -> (i32, i32) {
    %c0_i32 = arith.constant 0 : i32
    %c0_i32_0 = arith.constant 0 : i32
    %c0_i32_1 = arith.constant 0 : i32
    return %c0_i32, %c0_i32_0 : i32, i32
  }
  func.func @transform_5(%arg0: i32) -> (i32, i32) {
    %c0_i32 = arith.constant 0 : i32
    %c0_i32_0 = arith.constant 0 : i32
    %c0_i32_1 = arith.constant 0 : i32
    return %c0_i32, %c0_i32_0 : i32, i32
  }
  func.func @transform_6(%arg0: i32) -> (i32, i32) {
    %c0_i32 = arith.constant 0 : i32
    %c0_i32_0 = arith.constant 0 : i32
    %c0_i32_1 = arith.constant 0 : i32
    return %c0_i32, %c0_i32_0 : i32, i32
  }
  func.func @transform_7(%arg0: i32) -> (i32, i32) {
    %c0_i32 = arith.constant 0 : i32
    %c0_i32_0 = arith.constant 0 : i32
    %c0_i32_1 = arith.constant 0 : i32
    return %c0_i32, %c0_i32_0 : i32, i32
  }
  func.func @transform_8(%arg0: i32) -> (i32, i32) {
    %c0_i32 = arith.constant 0 : i32
    %c0_i32_0 = arith.constant 0 : i32
    %c0_i32_1 = arith.constant 0 : i32
    return %c0_i32, %c0_i32_0 : i32, i32
  }
  func.func @transform_9(%arg0: i32) -> (i32, i32) {
    %c0_i32 = arith.constant 0 : i32
    %c0_i32_0 = arith.constant 0 : i32
    %c0_i32_1 = arith.constant 0 : i32
    return %c0_i32, %c0_i32_0 : i32, i32
  }
  func.func @transform_10(%arg0: i32) -> (i32, i32) {
    %c0_i32 = arith.constant 0 : i32
    %c0_i32_0 = arith.constant 0 : i32
    %c0_i32_1 = arith.constant 0 : i32
    return %c0_i32, %c0_i32_0 : i32, i32
  }
  func.func @transform_11(%arg0: i32) -> (i32, i32) {
    %c0_i32 = arith.constant 0 : i32
    %c0_i32_0 = arith.constant 0 : i32
    %c0_i32_1 = arith.constant 0 : i32
    return %c0_i32, %c0_i32_0 : i32, i32
  }
  func.func @transform_12(%arg0: i32) -> (i32, i32) {
    %c0_i32 = arith.constant 0 : i32
    %c0_i32_0 = arith.constant 0 : i32
    %c0_i32_1 = arith.constant 0 : i32
    return %c0_i32, %c0_i32_0 : i32, i32
  }
  func.func @transform_13(%arg0: i32) -> (i32, i32) {
    %c0_i32 = arith.constant 0 : i32
    %c0_i32_0 = arith.constant 0 : i32
    %c0_i32_1 = arith.constant 0 : i32
    return %c0_i32, %c0_i32_0 : i32, i32
  }
  func.func @transform_14(%arg0: i32) -> (i32, i32) {
    %c0_i32 = arith.constant 0 : i32
    %c0_i32_0 = arith.constant 0 : i32
    %c0_i32_1 = arith.constant 0 : i32
    return %c0_i32, %c0_i32_0 : i32, i32
  }
  func.func @transform_15(%arg0: i32) -> (i32, i32) {
    %c0_i32 = arith.constant 0 : i32
    %c0_i32_0 = arith.constant 0 : i32
    %c0_i32_1 = arith.constant 0 : i32
    return %c0_i32, %c0_i32_0 : i32, i32
  }
  func.func @transform_16(%arg0: i32) -> (i32, i32) {
    %c0_i32 = arith.constant 0 : i32
    %c0_i32_0 = arith.constant 0 : i32
    %c0_i32_1 = arith.constant 0 : i32
    return %c0_i32, %c0_i32_0 : i32, i32
  }
  func.func @transform_17(%arg0: i32) -> (i32, i32) {
    %c0_i32 = arith.constant 0 : i32
    %c0_i32_0 = arith.constant 0 : i32
    %c0_i32_1 = arith.constant 0 : i32
    return %c0_i32, %c0_i32_0 : i32, i32
  }
  func.func @transform_18(%arg0: i32) -> (i32, i32, i32) {
    %c0_i32 = arith.constant 0 : i32
    %c0_i32_0 = arith.constant 0 : i32
    %c0_i32_1 = arith.constant 0 : i32
    return %arg0, %c0_i32, %c0_i32_0 : i32, i32, i32
  }
}

</mosaic_0001>

<bundles_post_ra>
// kernel: cond_attention_forward.1
= control target key start
LH: loop header
LB: loop body
LE: loop exit
PB: predicated region body
PF: predicated region fallthrough
CT: control target
= control target key end

     0   :  { %s4215_s27 = smov 0   ;;  %s5158_s0 = inlined_call_operand.vmem [shape: f32[2,16,512], index: 0, kind: input, shape index: {}, may-alias: {0,18}]   ;;  %s5159_s1 = inlined_call_operand.vmem [shape: f32[1,16,10], index: 1, kind: input, shape index: {}]   ;;  %s5160_s2 = inlined_call_operand.vmem [shape: f32[512,64], index: 2, kind: input, shape index: {}]   ;;  %s5161_s3 = inlined_call_operand.vmem [shape: f32[64,512], index: 3, kind: input, shape index: {}]   ;;  %s5162_s4 = inlined_call_operand.vmem [shape: f32[16,64], index: 4, kind: input, shape index: {}]   ;;  %s5163_s5 = inlined_call_operand.vmem [shape: f32[16,16], index: 5, kind: input, shape index: {}]   ;;  %s5164_s6 = inlined_call_operand.vmem [shape: f32[16,16], index: 6, kind: input, shape index: {}]   ;;  %s5165_s7 = inlined_call_operand.vmem [shape: f32[16,1], index: 7, kind: input, shape index: {}]   ;;  %s5166_s8 = inlined_call_operand.vmem [shape: f32[32,16], index: 8, kind: input, shape index: {}]   ;;  %s5167_s9 = inlined_call_operand.vmem [shape: f32[32,1], index: 9, kind: input, shape index: {}]   ;;  %s5168_s10 = inlined_call_operand.vmem [shape: f32[32,16], index: 10, kind: input, shape index: {}]   ;;  %s5169_s11 = inlined_call_operand.vmem [shape: f32[32,1], index: 11, kind: input, shape index: {}]   ;;  %s5170_s12 = inlined_call_operand.vmem [shape: f32[16,32], index: 12, kind: input, shape index: {}]   ;;  %s5171_s13 = inlined_call_operand.vmem [shape: f32[16,1], index: 13, kind: input, shape index: {}]   ;;  %s5172_s14 = inlined_call_operand.vmem [shape: f32[16,16], index: 14, kind: input, shape index: {}]   ;;  %s5173_s15 = inlined_call_operand.vmem [shape: f32[16,1], index: 15, kind: input, shape index: {}]   ;;  %s5174_s16 = inlined_call_operand.vmem [shape: f32[16,1], index: 16, kind: input, shape index: {}]   ;;  %s5175_s17 = inlined_call_operand.vmem [shape: f32[16,1], index: 17, kind: input, shape index: {}]   ;;  %s5176_s18 = inlined_call_operand.vmem [shape: f32[2,16,512], index: 18, kind: output, shape index: {}, may-alias: {0,18}]  }
   0x1   :  { %5182 = sst [smem:[#allocation3_spill]] %s5158_s0 }
   0x2   :  { %5183 = sst [smem:[#allocation4_spill]] %s5159_s1 }
   0x3   :  { %5184 = sst [smem:[#allocation5_spill]] %s5160_s2 }
   0x4 LB: > { %5185 = sst [smem:[#allocation2_spill]] %s4114_s27  ;;  %s5179_s28 = sadd.s32 4294967295, %s4114_s27   ;;  %s4114_s27 = sphi %s4215_s27, %s28_s27  }
   0x5   : > { %p3286_p0 = scmp.ge.s32.totalorder %s4114_s27, 1  ;;  %p512_p1 = scmp.lt.s32.totalorder %s4114_s27, 3 }
   0x7   : > { %p513_p2 = pnand %p3286_p0, %p512_p1 }
   0x8   : > { %s5186_s0 = sld [smem:[#allocation5_spill]] (!%p513_p2)  ;;  %p4297_p3 = scmp.lt.s32.totalorder (!%p513_p2), %s5179_s28, 1  ;;  %vm816_vm0 = vcmask (!%p513_p2), 130048   ;;  %vm1082_vm1 = vcmask (!%p513_p2), 1043456   ;;  %vm1057_vm2 = vcmask (!%p513_p2), 31744   ;;  %vm1191_vm3 = vcmask (!%p513_p2), 80896  }
   0x9   : > { %516 = sbr.rel (%p513_p2) target bundleno = 3538 (0xdd2), region = 92  ;;  %s5188_s19 = sadd.s32 (!%p513_p2), 4294967295, %s4114_s27   ;;  %vm4118_vm4 = vmmov (!%p513_p2), 0   ;;  %vm4666_vm5 = vmpackc.low (!%p513_p2), %vm1191_vm3, %vm1191_vm3  ;;  %vm2571_vm6 = vcmask (!%p513_p2), 261120   ;;  %vm2796_vm7 = vcmask (!%p513_p2), 523264  }
   0xa   : > { %s5189_s24 = sld [smem:[#allocation3_spill]] (!%p513_p2)  ;;  %s5190_s27 = sld [smem:[#allocation4_spill]] (!%p513_p2) }
   0xe   : > { %v600_v0 = vld [vmem:[%s5186_s0 + $0x80] sm:$0xff] (!%p513_p2)  ;;  %v601_v1 = vld [vmem:[%s5186_s0 + $0x88] sm:$0xff] (!%p513_p2)  ;;  %v602_v11 = vld [vmem:[%s5186_s0 + $0x90] sm:$0xff] (!%p513_p2) }
   0xf   : > { %v632_v2 = vld [vmem:[%s5186_s0 + $0x180] sm:$0xff] (!%p513_p2)  ;;  %v3762_v3 = vpack.c.bf16 (!%p513_p2), %v601_v1, %v600_v0  ;;  %v633_v4 = vld [vmem:[%s5186_s0 + $0x188] sm:$0xff] (!%p513_p2)  ;;  %v603_v13 = vld [vmem:[%s5186_s0 + $0x98] sm:$0xff] (!%p513_p2) }
  0x10   : > { %v584_v5 = vld [vmem:[%s5186_s0] sm:$0xff]  ;;  %v585_v6 = vld [vmem:[%s5186_s0 + $0x8] sm:$0xff]  ;;  %v3794_v7 = vpack.c.bf16 %v633_v4, %v632_v2  ;;  %v634_v14 = vld [vmem:[%s5186_s0 + $0x190] sm:$0xff]  ;;  %v3766_v16 = vpack.c.bf16 %v603_v13, %v602_v11  ;;  %s5197_s19 = smov (!%p4297_p3, %s5188_s19), 1  ;;  %s5191_s29 = smov %s5190_s27 }
  0x11   : > { %v3764_v8 = vpack.c.bf16 %v585_v6, %v584_v5  ;;  %v616_v9 = vld [vmem:[%s5186_s0 + $0x100] sm:$0xff]  ;;  %v617_v10 = vld [vmem:[%s5186_s0 + $0x108] sm:$0xff]  ;;  %3763 = vmatprep.subr.bf16.mxu0 %v3762_v3  ;;  %v635_v15 = vld [vmem:[%s5186_s0 + $0x198] sm:$0xff]  ;;  %s5181_s28 = sshll.u32 %s5197_s19, 6  ;;  %s5194_s20 = sshll.u32 %s5197_s19, 6 }
  0x12   : > { %v3796_v12 = vpack.c.bf16 %v617_v10, %v616_v9  ;;  %3795 = vmatprep.subr.bf16.mxu1 %v3794_v7  ;;  %v3798_v17 = vpack.c.bf16 %v635_v15, %v634_v14  ;;  %v586_v18 = vld [vmem:[%s5186_s0 + $0x10] sm:$0xff]  ;;  %v587_v19 = vld [vmem:[%s5186_s0 + $0x18] sm:$0xff]  ;;  %v604_v23 = vld [vmem:[%s5186_s0 + $0xa0] sm:$0xff]  ;;  %s4391_s25 = scalar_lea.vmem %s5189_s24, %s5181_s28  ;;  %s575_s2 = scalar_lea.vmem %s5176_s18, %s5194_s20 }
  0x13   : > { %3765 = vmatpush3.bf16.msra.mxu0 %v3764_v8  ;;  %v618_v20 = vld [vmem:[%s5186_s0 + $0x110] sm:$0xff]  ;;  %v3768_v21 = vpack.c.bf16 %v587_v19, %v586_v18  ;;  %v619_v22 = vld [vmem:[%s5186_s0 + $0x118] sm:$0xff]  ;;  %v605_v24 = vld [vmem:[%s5186_s0 + $0xa8] sm:$0xff] }
  0x14   : > { %3797 = vmatpush3.bf16.msra.mxu1 %v3796_v12  ;;  %3767 = vmatprep.subr.bf16.mxu0 %v3766_v16  ;;  %v3800_v25 = vpack.c.bf16 %v619_v22, %v618_v20  ;;  %v3770_v26 = vpack.c.bf16 %v605_v24, %v604_v23  ;;  %v636_v27 = vld [vmem:[%s5186_s0 + $0x1a0] sm:$0xff]  ;;  %v637_v28 = vld [vmem:[%s5186_s0 + $0x1a8] sm:$0xff]  ;;  %v606_v35 = vld [vmem:[%s5186_s0 + $0xb0] sm:$0xff] }
  0x15   : > { %3799 = vmatprep.subr.bf16.mxu1 %v3798_v17  ;;  %v588_v29 = vld [vmem:[%s5186_s0 + $0x20] sm:$0xff]  ;;  %v3802_v30 = vpack.c.bf16 %v637_v28, %v636_v27  ;;  %v589_v31 = vld [vmem:[%s5186_s0 + $0x28] sm:$0xff]  ;;  %v607_v36 = vld [vmem:[%s5186_s0 + $0xb8] sm:$0xff] }
  0x16   : > { %v620_v32 = vld [vmem:[%s5186_s0 + $0x120] sm:$0xff]  ;;  %v621_v33 = vld [vmem:[%s5186_s0 + $0x128] sm:$0xff]  ;;  %v3772_v34 = vpack.c.bf16 %v589_v31, %v588_v29  ;;  %v638_v37 = vld [vmem:[%s5186_s0 + $0x1b0] sm:$0xff]  ;;  %v3774_v39 = vpack.c.bf16 %v607_v36, %v606_v35 }
  0x17   : > { %3769 = vmatpush3.bf16.msra.mxu0 %v3768_v21  ;;  %v3804_v38 = vpack.c.bf16 %v621_v33, %v620_v32  ;;  %v639_v40 = vld [vmem:[%s5186_s0 + $0x1b8] sm:$0xff]  ;;  %v590_v41 = vld [vmem:[%s5186_s0 + $0x30] sm:$0xff]  ;;  %v608_v46 = vld [vmem:[%s5186_s0 + $0xc0] sm:$0xff] }
  0x18   : > { %3801 = vmatpush3.bf16.msra.mxu1 %v3800_v25  ;;  %3771 = vmatprep.subr.bf16.mxu0 %v3770_v26  ;;  %v591_v42 = vld [vmem:[%s5186_s0 + $0x38] sm:$0xff]  ;;  %v3806_v43 = vpack.c.bf16 %v639_v40, %v638_v37  ;;  %v622_v44 = vld [vmem:[%s5186_s0 + $0x130] sm:$0xff]  ;;  %v609_v47 = vld [vmem:[%s5186_s0 + $0xc8] sm:$0xff] }
  0x19   : > { %3803 = vmatprep.subr.bf16.mxu1 %v3802_v30  ;;  %v623_v45 = vld [vmem:[%s5186_s0 + $0x138] sm:$0xff]  ;;  %v640_v48 = vld [vmem:[%s5186_s0 + $0x1c0] sm:$0xff]  ;;  %v641_v49 = vld [vmem:[%s5186_s0 + $0x1c8] sm:$0xff]  ;;  %v3776_v50 = vpack.c.bf16 %v591_v42, %v590_v41  ;;  %v3778_v52 = vpack.c.bf16 %v609_v47, %v608_v46  ;;  %v4116_v47 = vmov 0  }
  0x1a   : > { %v3808_v51 = vpack.c.bf16 %v623_v45, %v622_v44  ;;  %v592_v53 = vld [vmem:[%s5186_s0 + $0x40] sm:$0xff]  ;;  %v593_v54 = vld [vmem:[%s5186_s0 + $0x48] sm:$0xff]  ;;  %v3810_v56 = vpack.c.bf16 %v641_v49, %v640_v48  ;;  %v610_v58 = vld [vmem:[%s5186_s0 + $0xd0] sm:$0xff]  ;;  %3966 = vset.pattern.permute.xlu0 %v4116_v47 }
  0x1b   : > { %3773 = vmatpush3.bf16.msra.mxu0 %v3772_v34  ;;  %v624_v55 = vld [vmem:[%s5186_s0 + $0x140] sm:$0xff]  ;;  %v625_v57 = vld [vmem:[%s5186_s0 + $0x148] sm:$0xff]  ;;  %v611_v59 = vld [vmem:[%s5186_s0 + $0xd8] sm:$0xff]  ;;  %v3780_v62 = vpack.c.bf16 %v593_v54, %v592_v53 }
  0x1c   : > { %3805 = vmatpush3.bf16.msra.mxu1 %v3804_v38  ;;  %3775 = vmatprep.subr.bf16.mxu0 %v3774_v39  ;;  %v642_v60 = vld [vmem:[%s5186_s0 + $0x1d0] sm:$0xff]  ;;  %v643_v61 = vld [vmem:[%s5186_s0 + $0x1d8] sm:$0xff]  ;;  %v3812_v63 = vpack.c.bf16 %v625_v57, %v624_v55  ;;  %v3782_v0 = vpack.c.bf16 %v611_v59, %v610_v58  ;;  %v612_v6 = vld [vmem:[%s5186_s0 + $0xe0] sm:$0xff] }
  0x1d   : > { %3807 = vmatprep.subr.bf16.mxu1 %v3806_v43  ;;  %v594_v1 = vld [vmem:[%s5186_s0 + $0x50] sm:$0xff]  ;;  %v595_v2 = vld [vmem:[%s5186_s0 + $0x58] sm:$0xff]  ;;  %v3814_v4 = vpack.c.bf16 %v643_v61, %v642_v60  ;;  %v613_v7 = vld [vmem:[%s5186_s0 + $0xe8] sm:$0xff] }
  0x1e   : > { %v626_v3 = vld [vmem:[%s5186_s0 + $0x150] sm:$0xff]  ;;  %v627_v5 = vld [vmem:[%s5186_s0 + $0x158] sm:$0xff]  ;;  %v644_v8 = vld [vmem:[%s5186_s0 + $0x1e0] sm:$0xff]  ;;  %v3784_v10 = vpack.c.bf16 %v595_v2, %v594_v1  ;;  %v3786_v14 = vpack.c.bf16 %v613_v7, %v612_v6 }
  0x1f   : > { %3777 = vmatpush3.bf16.msra.mxu0 %v3776_v50  ;;  %v645_v9 = vld [vmem:[%s5186_s0 + $0x1e8] sm:$0xff]  ;;  %v596_v11 = vld [vmem:[%s5186_s0 + $0x60] sm:$0xff]  ;;  %v3816_v13 = vpack.c.bf16 %v627_v5, %v626_v3  ;;  %v579_v17 = vld [vmem:[%s4391_s25 + $0x18] sm:$0xff] }
  0x20   : > { %3809 = vmatpush3.bf16.msra.mxu1 %v3808_v51  ;;  %3779 = vmatprep.subr.bf16.mxu0 %v3778_v52  ;;  %v597_v12 = vld [vmem:[%s5186_s0 + $0x68] sm:$0xff]  ;;  %v628_v15 = vld [vmem:[%s5186_s0 + $0x160] sm:$0xff]  ;;  %v3818_v18 = vpack.c.bf16 %v645_v9, %v644_v8  ;;  %v614_v20 = vld [vmem:[%s5186_s0 + $0xf0] sm:$0xff] }
  0x21   : > { %3811 = vmatprep.subr.bf16.mxu1 %v3810_v56  ;;  %v577_v16 = vld [vmem:[%s4391_s25 + $0x8] sm:$0xff]  ;;  %v615_v21 = vld [vmem:[%s5186_s0 + $0xf8] sm:$0xff]  ;;  %v646_v22 = vld [vmem:[%s5186_s0 + $0x1f0] sm:$0xff]  ;;  %787 = vmatprep.mubr.f32.mxu1 %v579_v17  ;;  %v3788_v24 = vpack.c.bf16 %v597_v12, %v596_v11 }
  0x22   : > { %v629_v19 = vld [vmem:[%s5186_s0 + $0x168] sm:$0xff]  ;;  %712 = vmatprep.mubr.f32.mxu0 %v577_v16  ;;  %v647_v23 = vld [vmem:[%s5186_s0 + $0x1f8] sm:$0xff]  ;;  %v3790_v26 = vpack.c.bf16 %v615_v21, %v614_v20  ;;  %v598_v27 = vld [vmem:[%s5186_s0 + $0x70] sm:$0xff] }
  0x23   : > { %3781 = vmatpush3.bf16.msra.mxu0 %v3780_v62  ;;  %v3820_v25 = vpack.c.bf16 %v629_v19, %v628_v15  ;;  %v599_v28 = vld [vmem:[%s5186_s0 + $0x78] sm:$0xff]  ;;  %v3822_v29 = vpack.c.bf16 %v647_v23, %v646_v22  ;;  %v630_v30 = vld [vmem:[%s5186_s0 + $0x170] sm:$0xff]  ;;  %v576_v34 = vld [vmem:[%s4391_s25] sm:$0xff] }
  0x24   : > { %3813 = vmatpush3.bf16.msra.mxu1 %v3812_v63  ;;  %3783 = vmatprep.subr.bf16.mxu0 %v3782_v0  ;;  %v631_v31 = vld [vmem:[%s5186_s0 + $0x178] sm:$0xff]  ;;  %v3792_v32 = vpack.c.bf16 %v599_v28, %v598_v27  ;;  %v578_v35 = vld [vmem:[%s4391_s25 + $0x10] sm:$0xff]  ;;  %v581_v36 = vld [vmem:[%s4391_s25 + $0x28] sm:$0xff] }
  0x25   : > { %3815 = vmatprep.subr.bf16.mxu1 %v3814_v4  ;;  %v3824_v33 = vpack.c.bf16 %v631_v31, %v630_v30  ;;  %v583_v37 = vld [vmem:[%s4391_s25 + $0x38] sm:$0xff]  ;;  %v580_v38 = vld [vmem:[%s4391_s25 + $0x20] sm:$0xff]  ;;  %v582_v39 = vld [vmem:[%s4391_s25 + $0x30] sm:$0xff] }
  0x26   : > { %v902_v40 = vld [vmem:[%s5190_s27] sm:$0xff]  ;;  %v903_v41 = vld [vmem:[%s5191_s29 + $0x8] sm:$0xff] }
  0x27   : > { %3785 = vmatpush3.bf16.msra.mxu0 %v3784_v10  ;;  %v3830_v42 = vpack.c.bf16 %v903_v41, %v902_v40  ;;  %v898_v43 = vld [vmem:[%s5166_s8] sm:$0xff]  ;;  %v899_v45 = vld [vmem:[%s5166_s8 + $0x8] sm:$0xff] }
  0x28   : > { %3817 = vmatpush3.bf16.msra.mxu1 %v3816_v13  ;;  %3787 = vmatprep.subr.bf16.mxu0 %v3786_v14  ;;  %v802_v44 = vld [vmem:[%s5164_s6] sm:$0xff]  ;;  %v799_v63 = vld [vmem:[%s5162_s4 + $0x8] sm:$0xff] }
  0x29   : > { %3819 = vmatprep.subr.bf16.mxu1 %v3818_v18  ;;  %v804_v46 = vld [vmem:[%s5165_s7] sm:$0xff]  ;;  %v803_v4 = vld [vmem:[%s5164_s6 + $0x8] sm:$0xff] }
  0x2a   : > { %808 = vperm.xlu0 %3966, %v804_v46   ;;  %v904_v48 = vld [vmem:[%s5167_s9] sm:$0xff] }
  0x2b   : > { %3789 = vmatpush3.bf16.msra.mxu0 %v3788_v24  ;;  %v798_v62 = vld [vmem:[%s5162_s4] sm:$0xff] }
  0x2c   : > { %3821 = vmatpush3.bf16.msra.mxu1 %v3820_v25  ;;  %3791 = vmatprep.subr.bf16.mxu0 %v3790_v26 }
  0x2d   : > { %3823 = vmatprep.subr.bf16.mxu1 %v3822_v29 }
  0x2e   : > { %910 = vperm.xlu0 %3966, %v904_v48  }
  0x2f   : > { %3793 = vmatpush3.bf16.msra.mxu0 %v3792_v32 }
  0x30   : > { %3825 = vmatpush3.bf16.msra.mxu1 %v3824_v33 }
  0x31   : > { %3831 = vmatprep.subr.bf16.mxu1 %v3830_v42 }
  0x32   : > { %713 = vmatmul.mubr.f32.vlgmr.msra.gmra.mrb[0].mxu0 %v576_v34 }
  0x33   : > { %788 = vmatmul.mubr.f32.vlgmr.msra.gmra.mrb[0].mxu1 %v578_v35  ;;  %717 = vmatprep.mubr.f32.mxu0 %v581_v36 }
  0x34   : > { %792 = vmatprep.mubr.f32.mxu1 %v583_v37  ;;  %3833 = vmatpush3.bf16.msra.mxu1 %v3830_v42 }
  0x36   : > { %718 = vmatmul.mubr.f32.gmra.mrb[2].mxu0 %v580_v38 }
  0x37   : > { %793 = vmatmul.mubr.f32.gmra.mrb[2].mxu1 %v582_v39  ;;  %3575 = vmatprep.mubr.msk.f32.mxu0 %vm816_vm0, %v802_v44 }
  0x38   : > { %3582 = vmatprep.mubr.msk.f32.mxu1 %vm816_vm0, %v898_v43 }
  0x3b   : > { %3583 = vmatmul.mubr.msk.f32.vlgmr.msra.gmra.mrb[4].mxu1 %vm816_vm0, %v899_v45 }
  0xa9   : > { %v809_v5 = vpop.permute.xlu0 %808 }
  0xad   : > { %v911_v6 = vpop.permute.xlu0 %910 }
 0x105   : > { %v3421_v49 = vpop.f32.mrb[0].mxu0 }
 0x106   : > { %v3459_v50 = vpop.f32.mrb[0].mxu1  ;;  %v3422_v51 = vpop.f32.mrb[1].mxu0 }
 0x107   : > { %v3423_v52 = vadd.f32 %v3422_v51, %v3421_v49  ;;  %v3460_v53 = vpop.f32.mrb[1].mxu1  ;;  %v901_v51 = vld [vmem:[%s5166_s8 + $0x18] sm:$0xff] }
 0x108   : > { %v3461_v54 = vadd.f32 %v3460_v53, %v3459_v50  ;;  %v900_v50 = vld [vmem:[%s5166_s8 + $0x10] sm:$0xff] }
 0x109   : > { %v3424_v55 = vpop.f32.mrb[2].mxu0  ;;  %3585 = vmatprep.mubr.msk.f32.mxu1 %vm816_vm0, %v900_v50 }
 0x10a   : > { %v4467_v56 = vadd.f32 %v3461_v54, %v3423_v52  ;;  %v3462_v57 = vpop.f32.mrb[2].mxu1  ;;  %v3425_v58 = vpop.f32.mrb[3].mxu0  ;;  %3586 = vmatmul.mubr.msk.f32.gmra.mrb[6].mxu1 %vm816_vm0, %v901_v51 }
 0x10b   : > { %v3426_v59 = vadd.f32 %v3425_v58, %v3424_v55  ;;  %v3463_v60 = vpop.f32.mrb[3].mxu1 }
 0x10c   : > { %v3464_v61 = vadd.f32 %v3463_v60, %v3462_v57  ;;  %v800_v1 = vadd.f32 %v798_v62, %v4467_v56 }
 0x10e   : > { %v4475_v0 = vadd.f32 %v3464_v61, %v3426_v59  ;;  %v4483_v7 = vpop.f32.mrb[4].mxu1 }
 0x10f   : > { %v1006_v8 = vpop.f32.mrb[5].mxu1 }
 0x110   : > { %v801_v2 = vadd.f32 %v799_v63, %v4475_v0  ;;  %v1007_v9 = vadd.f32 %v1006_v8, %v911_v6 }
 0x112   : > { %v3826_v3 = vpack.c.bf16 %v801_v2, %v800_v1  ;;  %v1412_v10 = vrot.slane %v1007_v9, 4 }
 0x114   : > { %3827 = vmatprep.subr.bf16.mxu0 %v3826_v3 }
 0x115   : > { %3829 = vmatpush3.bf16.msra.mxu0 %v3826_v3 }
 0x116   : > { %3588 = vmatprep.subr.msk.mxu0 %vm1082_vm1, %v1007_v9 }
 0x118   : > { %3576 = vmatmul.mubr.msk.f32.vlgmr.msra.gmra.mrb[4].mxu0 %vm816_vm0, %v803_v4 }
 0x119   : > { %3589 = vmatpush3.msk.msra.mxu0 %vm1082_vm1, %v1007_v9 }
 0x11a   : > { %3621 = vmatprep.subr.msk.mxu0 %vm1082_vm1, %v1412_v10 }
 0x1eb   : > { %v4488_v11 = vpop.f32.mrb[4].mxu0 }
 0x1ec   : > { %v889_v12 = vpop.f32.mrb[5].mxu0 }
 0x1ed   : > { %v890_v13 = vadd.f32 %v889_v12, %v809_v5 }
 0x1ef   : > { %1025 = vxpose.xlu1.b32.start.end [1/1] (short) (narrow) %v890_v13, 64  ;;  %v1378_v14 = vrot.slane %v890_v13, 4 }
 0x20c   : > { %1380 = vxpose.xlu1.b32.start.end [1/1] (short) (narrow) %v1378_v14, 64 }
 0x22a   : > { %3967 = vset.pattern.permute.xlu1 %v4116_v47 }
 0x26f   : > { %v1041_v15 = vpop.trf.xlu1 }
 0x270   : > { %3590 = vmatprep.mubr.msk.f32.mxu0 %vm1057_vm2, %v1041_v15 }
 0x273   : > { %v1042_v16 = vpop.trf.xlu1 }
 0x274   : > { %3591 = vmatmul.mubr.msk.f32.vlgmr.msra.gmra.mrb[6].mxu0 %vm1057_vm2, %v1042_v16 }
 0x275   : > { %3622 = vmatpush3.msk.msra.mxu0 %vm1082_vm1, %v1412_v10 }
 0x277   : > { %v1043_v17 = vpop.trf.xlu1 }
 0x278   : > { %3593 = vmatprep.mubr.msk.f32.mxu0 %vm1057_vm2, %v1043_v17 }
 0x27b   : > { %v1044_v18 = vpop.trf.xlu1 }
 0x27c   : > { %3594 = vmatmul.mubr.msk.f32.gmra.mrb[8].mxu0 %vm1057_vm2, %v1044_v18 }
 0x27f   : > { %v1045_v19 = vpop.trf.xlu1 }
 0x280   : > { %3596 = vmatprep.mubr.msk.f32.mxu0 %vm1057_vm2, %v1045_v19 }
 0x283   : > { %v1046_v20 = vpop.trf.xlu1 }
 0x284   : > { %3597 = vmatmul.mubr.msk.f32.gmra.mrb[10].mxu0 %vm1057_vm2, %v1046_v20 }
 0x287   : > { %v1047_v21 = vpop.trf.xlu1 }
 0x288   : > { %3599 = vmatprep.mubr.msk.f32.mxu0 %vm1057_vm2, %v1047_v21 }
 0x28b   : > { %v1048_v22 = vpop.trf.xlu1 }
 0x28c   : > { %3600 = vmatmul.mubr.msk.f32.gmra.mrb[12].mxu0 %vm1057_vm2, %v1048_v22 }
 0x28f   : > { %v1396_v23 = vpop.trf.xlu1 }
 0x290   : > { %3623 = vmatprep.mubr.msk.f32.mxu0 %vm1057_vm2, %v1396_v23 }
 0x293   : > { %v1397_v24 = vpop.trf.xlu1 }
 0x294   : > { %3624 = vmatmul.mubr.msk.f32.vlgmr.msra.gmra.mrb[14].mxu0 %vm1057_vm2, %v1397_v24 }
 0x297   : > { %v1398_v25 = vpop.trf.xlu1 }
 0x298   : > { %3626 = vmatprep.mubr.msk.f32.mxu0 %vm1057_vm2, %v1398_v25 }
 0x29b   : > { %v1399_v26 = vpop.trf.xlu1 }
 0x29c   : > { %3627 = vmatmul.mubr.msk.f32.gmra.mrb[16].mxu0 %vm1057_vm2, %v1399_v26 }
 0x29f   : > { %v1400_v27 = vpop.trf.xlu1 }
 0x2a0   : > { %3629 = vmatprep.mubr.msk.f32.mxu0 %vm1057_vm2, %v1400_v27 }
 0x2a3   : > { %v1401_v28 = vpop.trf.xlu1 }
 0x2a4   : > { %3630 = vmatmul.mubr.msk.f32.gmra.mrb[18].mxu0 %vm1057_vm2, %v1401_v28 }
 0x2a7   : > { %v1402_v29 = vpop.trf.xlu1 }
 0x2a8   : > { %3632 = vmatprep.mubr.msk.f32.mxu0 %vm1057_vm2, %v1402_v29 }
 0x2ab   : > { %v1403_v30 = vpop.trf.xlu1 }
 0x2ac   : > { %3633 = vmatmul.mubr.msk.f32.gmra.mrb[20].mxu0 %vm1057_vm2, %v1403_v30 }
 0x347   : > { %v3592_v31 = vpop.f32.mrb[6].mxu0 }
 0x348   : > { %v1152_v32 = vpop.f32.mrb[7].mxu0  ;;  %v1195_v34 = vsel %vm1191_vm3, %v3592_v31, -inf }
 0x349   : > { %v1192_v33 = vsel %vm1191_vm3, %v1152_v32, -inf }
 0x34a   : > { %1193 = vmax.xlane.f32.xlu0 %v1192_v33 }
 0x34e   : > { %1196 = vmax.xlane.f32.xlu0 %v1195_v34 }
 0x34f   : > { %v3595_v35 = vpop.f32.mrb[8].mxu0 }
 0x350   : > { %v1162_v36 = vpop.f32.mrb[9].mxu0  ;;  %v1201_v38 = vsel %vm1191_vm3, %v3595_v35, -inf }
 0x351   : > { %v1198_v37 = vsel %vm1191_vm3, %v1162_v36, -inf }
 0x352   : > { %1199 = vmax.xlane.f32.xlu0 %v1198_v37 }
 0x356   : > { %1202 = vmax.xlane.f32.xlu0 %v1201_v38 }
 0x357   : > { %v4511_v39 = vpop.f32.mrb[10].mxu0 }
 0x358   : > { %v4513_v40 = vpop.f32.mrb[11].mxu0  ;;  %v1207_v42 = vsel %vm1191_vm3, %v4511_v39, -inf }
 0x359   : > { %v1204_v41 = vsel %vm1191_vm3, %v4513_v40, -inf }
 0x35a   : > { %1205 = vmax.xlane.f32.xlu0 %v1204_v41 }
 0x35e   : > { %1208 = vmax.xlane.f32.xlu0 %v1207_v42 }
 0x35f   : > { %v4519_v43 = vpop.f32.mrb[12].mxu0 }
 0x360   : > { %v4521_v44 = vpop.f32.mrb[13].mxu0  ;;  %v1213_v2 = vsel %vm1191_vm3, %v4519_v43, -inf }
 0x361   : > { %v1210_v45 = vsel %vm1191_vm3, %v4521_v44, -inf }
 0x362   : > { %1211 = vmax.xlane.f32.xlu0 %v1210_v45 }
 0x367   : > { %v4525_v46 = vpop.f32.mrb[14].mxu0 }
 0x368   : > { %v4527_v47 = vpop.f32.mrb[15].mxu0  ;;  %v1547_v48 = vsel %vm1191_vm3, %v4525_v46, -inf }
 0x369   : > { %1548 = vmax.xlane.f32.xlu1 %v1547_v48  ;;  %v1544_v49 = vsel %vm1191_vm3, %v4527_v47, -inf }
 0x36a   : > { %1545 = vmax.xlane.f32.xlu0 %v1544_v49 }
 0x36f   : > { %v4541_v52 = vpop.f32.mrb[16].mxu0 }
 0x370   : > { %v4543_v53 = vpop.f32.mrb[17].mxu0  ;;  %v1553_v54 = vsel %vm1191_vm3, %v4541_v52, -inf }
 0x371   : > { %1554 = vmax.xlane.f32.xlu0 %v1553_v54  ;;  %v1550_v55 = vsel %vm1191_vm3, %v4543_v53, -inf }
 0x375   : > { %1551 = vmax.xlane.f32.xlu0 %v1550_v55 }
 0x377   : > { %v4549_v57 = vpop.f32.mrb[18].mxu0 }
 0x378   : > { %v1559_v58 = vsel %vm1191_vm3, %v4549_v57, -inf  ;;  %v4553_v59 = vpop.f32.mrb[19].mxu0 }
 0x379   : > { %1560 = vmax.xlane.f32.xlu0 %v1559_v58  ;;  %v1556_v60 = vsel %vm1191_vm3, %v4553_v59, -inf }
 0x37d   : > { %1557 = vmax.xlane.f32.xlu0 %v1556_v60 }
 0x37f   : > { %v4557_v61 = vpop.f32.mrb[20].mxu0 }
 0x380   : > { %v1565_v62 = vsel %vm1191_vm3, %v4557_v61, -inf  ;;  %v4561_v63 = vpop.f32.mrb[21].mxu0 }
 0x381   : > { %1566 = vmax.xlane.f32.xlu0 %v1565_v62  ;;  %v1562_v1 = vsel %vm1191_vm3, %v4561_v63, -inf }
 0x385   : > { %1563 = vmax.xlane.f32.xlu0 %v1562_v1 }
 0x389   : > { %1214 = vmax.xlane.f32.xlu0 %v1213_v2 }
 0x3d7   : > { %v1194_v3 = vpop.xlane.xlu0 %1193 }
 0x3d8   : > { %v1216_v4 = vsub.f32 %v1152_v32, %v1194_v3 }
 0x3da   : > { %v1224_v5 = vmul.f32 1.442695, %v1216_v4 }
 0x3db   : > { %v1197_v6 = vpop.xlane.xlu0 %1196 }
 0x3dc   : > { %3968 = vpow2.f32 %v1224_v5  ;;  %v1217_v8 = vsub.f32 %v3592_v31, %v1197_v6 }
 0x3de   : > { %v1226_v9 = vmul.f32 1.442695, %v1217_v8 }
 0x3df   : > { %v1200_v10 = vpop.xlane.xlu0 %1199 }
 0x3e0   : > { %3970 = vpow2.f32 %v1226_v9  ;;  %v1218_v12 = vsub.f32 %v1162_v36, %v1200_v10 }
 0x3e2   : > { %v1228_v13 = vmul.f32 1.442695, %v1218_v12 }
 0x3e3   : > { %v1203_v14 = vpop.xlane.xlu0 %1202 }
 0x3e4   : > { %3972 = vpow2.f32 %v1228_v13  ;;  %v1219_v15 = vsub.f32 %v3595_v35, %v1203_v14 }
 0x3e6   : > { %v4567_v16 = vpop.eup %3968  ;;  %v1230_v17 = vmul.f32 1.442695, %v1219_v15 }
 0x3e7   : > { %v1206_v18 = vpop.xlane.xlu0 %1205  ;;  %v1240_v19 = vsel %vm1191_vm3, %v4567_v16, 0.0 }
 0x3e8   : > { %3974 = vpow2.f32 %v1230_v17  ;;  %1241 = vadd.xlane.f32.xlu1 %v1240_v19  ;;  %v1220_v34 = vsub.f32 %v4513_v40, %v1206_v18 }
 0x3ea   : > { %v4571_v20 = vpop.eup %3970  ;;  %v1232_v37 = vmul.f32 1.442695, %v1220_v34 }
 0x3eb   : > { %v1243_v21 = vsel %vm1191_vm3, %v4571_v20, 0.0  ;;  %v1209_v22 = vpop.xlane.xlu0 %1208 }
 0x3ec   : > { %1244 = vadd.xlane.f32.xlu0 %v1243_v21  ;;  %v1221_v38 = vsub.f32 %v4511_v39, %v1209_v22 }
 0x3ee   : > { %v4575_v23 = vpop.eup %3972 }
 0x3ef   : > { %v1246_v24 = vsel %vm1191_vm3, %v4575_v23, 0.0  ;;  %v1212_v26 = vpop.xlane.xlu0 %1211 }
 0x3f0   : > { %1247 = vadd.xlane.f32.xlu1 %v1246_v24  ;;  %v1222_v4 = vsub.f32 %v4521_v44, %v1212_v26 }
 0x3f2   : > { %v4579_v25 = vpop.eup %3974  ;;  %v1236_v10 = vmul.f32 1.442695, %v1222_v4 }
 0x3f3   : > { %v1249_v27 = vsel %vm1191_vm3, %v4579_v25, 0.0 }
 0x3f4   : > { %1250 = vadd.xlane.f32.xlu0 %v1249_v27 }
 0x3f6   : > { %v1549_v28 = vpop.xlane.xlu1 %1548 }
 0x3f7   : > { %v1569_v29 = vsub.f32 %v4525_v46, %v1549_v28  ;;  %v1546_v30 = vpop.xlane.xlu0 %1545 }
 0x3f8   : > { %v1568_v31 = vsub.f32 %v4527_v47, %v1546_v30  ;;  %v1234_v47 = vmul.f32 1.442695, %v1221_v38  ;;  %v906_v30 = vld [vmem:[%s5167_s9 + $0x10] sm:$0xff] }
 0x3f9   : > { %v1578_v32 = vmul.f32 1.442695, %v1569_v29 }
 0x3fa   : > { %v1576_v33 = vmul.f32 1.442695, %v1568_v31  ;;  %v4647_v31 = vpop.f32.mrb[6].mxu1 }
 0x3fb   : > { %3976 = vpow2.f32 %v1578_v32  ;;  %v4649_v32 = vpop.f32.mrb[7].mxu1 }
 0x3fc   : > { %3978 = vpow2.f32 %v1576_v33  ;;  %v905_v33 = vld [vmem:[%s5167_s9 + $0x8] sm:$0xff] }
 0x3fe   : > { %v1555_v35 = vpop.xlane.xlu0 %1554 }
 0x3ff   : > { %v1571_v36 = vsub.f32 %v4541_v52, %v1555_v35  ;;  %v4117_v52 = vmov 0.0|0.0   ;;  %v4119_v35 = vmov 0.0  }
 0x400   : > { %3834 = vmatprep.subr.bf16.mxu1 %v4117_v52  ;;  %3850 = vmatprep.subr.bf16.mxu0 %v4117_v52 }
 0x401   : > { %v1582_v41 = vmul.f32 1.442695, %v1571_v36  ;;  %3618 = vmatprep.mubr.msk.f32.mxu1 %vm4118_vm4, %v4119_v35  ;;  %3651 = vmatprep.mubr.msk.f32.mxu0 %vm4118_vm4, %v4119_v35 }
 0x402   : > { %v1552_v42 = vpop.xlane.xlu0 %1551 }
 0x403   : > { %3980 = vpow2.f32 %v1582_v41  ;;  %v1570_v45 = vsub.f32 %v4543_v53, %v1552_v42 }
 0x404   : > { %3982 = vpow2.f32 %v1232_v37 }
 0x405   : > { %v4589_v46 = vpop.eup %3976  ;;  %v1580_v48 = vmul.f32 1.442695, %v1570_v45 }
 0x406   : > { %v1561_v49 = vpop.xlane.xlu0 %1560  ;;  %v1595_v40 = vsel %vm1191_vm3, %v4589_v46, 0.0  ;;  %v4593_v50 = vpop.eup %3978 }
 0x407   : > { %3984 = vpow2.f32 %v1580_v48  ;;  %v1573_v51 = vsub.f32 %v4549_v57, %v1561_v49  ;;  %1596 = vadd.xlane.f32.xlu0 %v1595_v40  ;;  %v1592_v54 = vsel %vm1191_vm3, %v4593_v50, 0.0 }
 0x408   : > { %3986 = vpow2.f32 %v1234_v47 }
 0x409   : > { %v1586_v39 = vmul.f32 1.442695, %v1573_v51 }
 0x40a   : > { %v1558_v53 = vpop.xlane.xlu0 %1557 }
 0x40b   : > { %v1572_v55 = vsub.f32 %v4553_v59, %v1558_v53  ;;  %1593 = vadd.xlane.f32.xlu0 %v1592_v54  ;;  %3988 = vpow2.f32 %v1586_v39 }
 0x40d   : > { %v4601_v58 = vpop.eup %3980  ;;  %v1584_v60 = vmul.f32 1.442695, %v1572_v55 }
 0x40e   : > { %v1567_v57 = vpop.xlane.xlu0 %1566  ;;  %v1601_v62 = vsel %vm1191_vm3, %v4601_v58, 0.0  ;;  %v4605_v1 = vpop.eup %3982 }
 0x40f   : > { %v1575_v2 = vsub.f32 %v4557_v61, %v1567_v57  ;;  %1602 = vadd.xlane.f32.xlu0 %v1601_v62  ;;  %3990 = vpow2.f32 %v1584_v60  ;;  %v1252_v8 = vsel %vm1191_vm3, %v4605_v1, 0.0 }
 0x411   : > { %v4608_v3 = vpop.eup %3984  ;;  %v1590_v59 = vmul.f32 1.442695, %v1575_v2 }
 0x412   : > { %v1564_v5 = vpop.xlane.xlu0 %1563  ;;  %v1598_v6 = vsel %vm1191_vm3, %v4608_v3, 0.0  ;;  %v4615_v9 = vpop.eup %3986 }
 0x413   : > { %1599 = vadd.xlane.f32.xlu1 %v1598_v6  ;;  %1253 = vadd.xlane.f32.xlu0 %v1252_v8  ;;  %3992 = vpow2.f32 %v1590_v59  ;;  %v1255_v12 = vsel %vm1191_vm3, %v4615_v9, 0.0  ;;  %v1574_v28 = vsub.f32 %v4561_v63, %v1564_v5 }
 0x414   : > { %3994 = vpow2.f32 %v1236_v10 }
 0x415   : > { %v4619_v44 = vpop.eup %3988  ;;  %v1588_v29 = vmul.f32 1.442695, %v1574_v28 }
 0x416   : > { %v1215_v61 = vpop.xlane.xlu0 %1214  ;;  %v1607_v15 = vsel %vm1191_vm3, %v4619_v44, 0.0 }
 0x417   : > { %v1223_v13 = vsub.f32 %v4519_v43, %v1215_v61  ;;  %1256 = vadd.xlane.f32.xlu0 %v1255_v12  ;;  %v805_v43 = vld [vmem:[%s5165_s7 + $0x8] sm:$0xff] }
 0x419   : > { %v1238_v14 = vmul.f32 1.442695, %v1223_v13  ;;  %v4624_v17 = vpop.eup %3990 }
 0x41a   : > { %v1604_v18 = vsel %vm1191_vm3, %v4624_v17, 0.0 }
 0x41b   : > { %1608 = vadd.xlane.f32.xlu0 %v1607_v15  ;;  %3996 = vpow2.f32 %v1238_v14 }
 0x41c   : > { %3998 = vpow2.f32 %v1588_v29 }
 0x41d   : > { %v4628_v19 = vpop.eup %3992 }
 0x41e   : > { %v1613_v21 = vsel %vm1191_vm3, %v4628_v19, 0.0  ;;  %v4635_v22 = vpop.eup %3994 }
 0x41f   : > { %1605 = vadd.xlane.f32.xlu0 %v1604_v18  ;;  %v1258_v24 = vsel %vm1191_vm3, %v4635_v22, 0.0 }
 0x423   : > { %1614 = vadd.xlane.f32.xlu0 %v1613_v21 }
 0x424   : > { %813 = vperm.xlu1 %3967, %v805_v43  }
 0x425   : > { %v4639_v26 = vpop.eup %3996 }
 0x426   : > { %v1261_v27 = vsel %vm1191_vm3, %v4639_v26, 0.0  ;;  %v4654_v34 = vpop.eup %3998 }
 0x427   : > { %1259 = vadd.xlane.f32.xlu0 %v1258_v24  ;;  %v1610_v63 = vsel %vm1191_vm3, %v4654_v34, 0.0 }
 0x42b   : > { %1262 = vadd.xlane.f32.xlu0 %v1261_v27 }
 0x441   : > { %920 = vperm.xlu0 %3966, %v906_v30  }
 0x445   : > { %915 = vperm.xlu0 %3966, %v905_v33  }
 0x448   : > { %1611 = vadd.xlane.f32.xlu1 %v1610_v63 }
 0x475   : > { %v1242_v36 = vpop.xlane.xlu1 %1241 }
 0x476   : > { %4000 = vrcp.f32 %v1242_v36 }
 0x479   : > { %v1245_v37 = vpop.xlane.xlu0 %1244 }
 0x47a   : > { %4002 = vrcp.f32 %v1245_v37 }
 0x47d   : > { %v1248_v38 = vpop.xlane.xlu1 %1247 }
 0x47e   : > { %4004 = vrcp.f32 %v1248_v38 }
 0x480   : > { %v4001_v42 = vpop.eup %4000 }
 0x481   : > { %v1251_v41 = vpop.xlane.xlu0 %1250  ;;  %v1272_v47 = vmul.f32 %v4001_v42, %v4567_v16 }
 0x482   : > { %4006 = vrcp.f32 %v1251_v41 }
 0x484   : > { %v4003_v45 = vpop.eup %4002 }
 0x485   : > { %v1273_v48 = vmul.f32 %v4003_v45, %v4571_v20 }
 0x487   : > { %v3835_v40 = vpack.c.bf16 %v1273_v48, %v1272_v47 }
 0x488   : > { %v4005_v51 = vpop.eup %4004 }
 0x489   : > { %3837 = vmatpush3.bf16.xpose.msk.msra.mxu1 %vm4666_vm5, %v3835_v40  ;;  %v1274_v53 = vmul.f32 %v4005_v51, %v4575_v23 }
 0x48a   : > { %3838 = vmatprep.subr.bf16.mxu1 %v4117_v52 }
 0x48c   : > { %v4007_v39 = vpop.eup %4006 }
 0x48d   : > { %v1275_v16 = vmul.f32 %v4007_v39, %v4579_v25 }
 0x48f   : > { %v3839_v54 = vpack.c.bf16 %v1275_v16, %v1274_v53 }
 0x491   : > { %3841 = vmatpush3.bf16.xpose.msk.msra.mxu1 %vm4666_vm5, %v3839_v54 }
 0x492   : > { %3842 = vmatprep.subr.bf16.mxu1 %v4117_v52 }
 0x494   : > { %v1597_v20 = vpop.xlane.xlu0 %1596 }
 0x495   : > { %4008 = vrcp.f32 %v1597_v20 }
 0x498   : > { %v1594_v55 = vpop.xlane.xlu0 %1593 }
 0x499   : > { %4010 = vrcp.f32 %v1594_v55 }
 0x49c   : > { %v1603_v60 = vpop.xlane.xlu0 %1602 }
 0x49d   : > { %4012 = vrcp.f32 %v1603_v60 }
 0x49f   : > { %v4009_v2 = vpop.eup %4008 }
 0x4a0   : > { %v1254_v57 = vpop.xlane.xlu0 %1253  ;;  %v1600_v62 = vpop.xlane.xlu1 %1599  ;;  %v1625_v23 = vmul.f32 %v4009_v2, %v4589_v46 }
 0x4a1   : > { %4014 = vrcp.f32 %v1600_v62 }
 0x4a2   : > { %4016 = vrcp.f32 %v1254_v57 }
 0x4a3   : > { %v4011_v4 = vpop.eup %4010 }
 0x4a4   : > { %v1624_v25 = vmul.f32 %v4011_v4, %v4593_v50  ;;  %v1257_v59 = vpop.xlane.xlu0 %1256  ;;  %v814_v5 = vpop.permute.xlu1 %813 }
 0x4a5   : > { %4018 = vrcp.f32 %v1257_v59  ;;  %v895_v6 = vadd.f32 %v4488_v11, %v814_v5 }
 0x4a6   : > { %v3851_v8 = vpack.c.bf16 %v1625_v23, %v1624_v25 }
 0x4a7   : > { %v2079_v10 = vrot.slane %v895_v6, 4  ;;  %1729 = vxpose.xlu0.b32.start.end [1/1] (short) (narrow) %v895_v6, 64  ;;  %v4013_v12 = vpop.eup %4012 }
 0x4a8   : > { %3853 = vmatpush3.bf16.xpose.msk.msra.mxu0 %vm4666_vm5, %v3851_v8  ;;  %v1609_v61 = vpop.xlane.xlu0 %1608  ;;  %v1627_v14 = vmul.f32 %v4013_v12, %v4601_v58 }
 0x4a9   : > { %2081 = vxpose.xlu1.b32.start.end [1/1] (short) (narrow) %v2079_v10, 64  ;;  %3854 = vmatprep.subr.bf16.mxu0 %v4117_v52  ;;  %4020 = vrcp.f32 %v1609_v61 }
 0x4ab   : > { %v4015_v46 = vpop.eup %4014 }
 0x4ac   : > { %v1606_v13 = vpop.xlane.xlu0 %1605  ;;  %v4017_v50 = vpop.eup %4016  ;;  %v1626_v15 = vmul.f32 %v4015_v46, %v4608_v3 }
 0x4ad   : > { %4022 = vrcp.f32 %v1606_v13  ;;  %v1276_v43 = vmul.f32 %v4017_v50, %v4605_v1 }
 0x4ae   : > { %v3855_v18 = vpack.c.bf16 %v1627_v14, %v1626_v15 }
 0x4af   : > { %v4019_v11 = vpop.eup %4018 }
 0x4b0   : > { %v1277_v21 = vmul.f32 %v4019_v11, %v4615_v9  ;;  %v1615_v24 = vpop.xlane.xlu0 %1614  ;;  %3857 = vmatpush3.bf16.xpose.msk.msra.mxu0 %vm4666_vm5, %v3855_v18 }
 0x4b1   : > { %3858 = vmatprep.subr.bf16.mxu0 %v4117_v52 }
 0x4b2   : > { %v3843_v27 = vpack.c.bf16 %v1277_v21, %v1276_v43 }
 0x4b3   : > { %v4021_v58 = vpop.eup %4020 }
 0x4b4   : > { %v1260_v28 = vpop.xlane.xlu0 %1259  ;;  %3845 = vmatpush3.bf16.xpose.msk.msra.mxu1 %vm4666_vm5, %v3843_v27  ;;  %v1629_v1 = vmul.f32 %v4021_v58, %v4619_v44 }
 0x4b5   : > { %3846 = vmatprep.subr.bf16.mxu1 %v4117_v52  ;;  %4024 = vrcp.f32 %v1260_v28 }
 0x4b7   : > { %v4023_v3 = vpop.eup %4022 }
 0x4b8   : > { %v1628_v9 = vmul.f32 %v4023_v3, %v4624_v17  ;;  %v1263_v29 = vpop.xlane.xlu0 %1262 }
 0x4b9   : > { %4026 = vrcp.f32 %v1263_v29 }
 0x4ba   : > { %v3859_v30 = vpack.c.bf16 %v1629_v1, %v1628_v9  ;;  %4028 = vrcp.f32 %v1615_v24 }
 0x4bc   : > { %3861 = vmatpush3.bf16.xpose.msk.msra.mxu0 %vm4666_vm5, %v3859_v30 }
 0x4bd   : > { %3862 = vmatprep.subr.bf16.mxu0 %v4117_v52 }
 0x4bf   : > { %v4025_v63 = vpop.eup %4024 }
 0x4c0   : > { %v921_v33 = vpop.permute.xlu0 %920  ;;  %v1278_v37 = vmul.f32 %v4025_v63, %v4635_v22 }
 0x4c1   : > { %v1017_v17 = vadd.f32 %v4649_v32, %v921_v33 }
 0x4c3   : > { %v4027_v36 = vpop.eup %4026  ;;  %v1632_v32 = vrot.slane %v1017_v17, 4 }
 0x4c4   : > { %v1279_v38 = vmul.f32 %v4027_v36, %v4639_v26  ;;  %v916_v41 = vpop.permute.xlu0 %915  ;;  %v4029_v26 = vpop.eup %4028 }
 0x4c5   : > { %v1012_v44 = vadd.f32 %v4483_v7, %v916_v41  ;;  %v1631_v7 = vmul.f32 %v4029_v26, %v4628_v19 }
 0x4c6   : > { %v3847_v42 = vpack.c.bf16 %v1279_v38, %v1278_v37 }
 0x4c7   : > { %v2113_v40 = vrot.slane %v1012_v44, 4 }
 0x4c8   : > { %3849 = vmatpush3.bf16.xpose.msk.msra.mxu1 %vm4666_vm5, %v3847_v42 }
 0x4c9   : > { %3654 = vmatprep.subr.msk.mxu1 %vm1082_vm1, %v1012_v44 }
 0x4cf   : > { %3619 = vmatmul.mubr.msk.f32.vlgmr.msra.gmra.mrb[8].mxu1 %vm1191_vm3, %v1017_v17 }
 0x4d0   : > { %3655 = vmatpush3.msk.msra.mxu1 %vm1082_vm1, %v1012_v44 }
 0x4d1   : > { %3866 = vmatprep.subr.bf16.mxu1 %v4117_v52 }
 0x4d5   : > { %v1612_v22 = vpop.xlane.xlu1 %1611 }
 0x4d6   : > { %4030 = vrcp.f32 %v1612_v22 }
 0x4e0   : > { %v4031_v45 = vpop.eup %4030 }
 0x4e1   : > { %v1630_v47 = vmul.f32 %v4031_v45, %v4654_v34 }
 0x4e3   : > { %v3863_v48 = vpack.c.bf16 %v1631_v7, %v1630_v47 }
 0x4e5   : > { %3865 = vmatpush3.bf16.xpose.msk.msra.mxu0 %vm4666_vm5, %v3863_v48 }
 0x4e6   : > { %3687 = vmatprep.subr.msk.mxu0 %vm1082_vm1, %v2113_v40 }
 0x4ec   : > { %3652 = vmatmul.mubr.msk.f32.vlgmr.msra.gmra.mrb[22].mxu0 %vm1191_vm3, %v1632_v32 }
 0x4ed   : > { %3688 = vmatpush3.msk.msra.mxu0 %vm1082_vm1, %v2113_v40 }
 0x4ee   : > { %3882 = vmatprep.subr.bf16.mxu0 %v4117_v52 }
 0x527   : > { %v1745_v51 = vpop.trf.xlu0 }
 0x528   : > { %3656 = vmatprep.mubr.msk.f32.mxu1 %vm1057_vm2, %v1745_v51 }
 0x529   : > { %v2097_v19 = vpop.trf.xlu1 }
 0x52a   : > { %3689 = vmatprep.mubr.msk.f32.mxu0 %vm1057_vm2, %v2097_v19 }
 0x52b   : > { %v1746_v34 = vpop.trf.xlu0 }
 0x52c   : > { %3657 = vmatmul.mubr.msk.f32.vlgmr.msra.gmra.mrb[10].mxu1 %vm1057_vm2, %v1746_v34 }
 0x52d   : > { %v2098_v39 = vpop.trf.xlu1 }
 0x52e   : > { %3690 = vmatmul.mubr.msk.f32.vlgmr.msra.gmra.mrb[24].mxu0 %vm1057_vm2, %v2098_v39 }
 0x52f   : > { %v1747_v53 = vpop.trf.xlu0 }
 0x530   : > { %3659 = vmatprep.mubr.msk.f32.mxu1 %vm1057_vm2, %v1747_v53 }
 0x531   : > { %v2099_v16 = vpop.trf.xlu1 }
 0x532   : > { %3692 = vmatprep.mubr.msk.f32.mxu0 %vm1057_vm2, %v2099_v16 }
 0x533   : > { %v1748_v54 = vpop.trf.xlu0 }
 0x534   : > { %3660 = vmatmul.mubr.msk.f32.gmra.mrb[12].mxu1 %vm1057_vm2, %v1748_v54 }
 0x535   : > { %v2100_v20 = vpop.trf.xlu1 }
 0x536   : > { %3693 = vmatmul.mubr.msk.f32.gmra.mrb[26].mxu0 %vm1057_vm2, %v2100_v20 }
 0x537   : > { %v1749_v55 = vpop.trf.xlu0 }
 0x538   : > { %3662 = vmatprep.mubr.msk.f32.mxu1 %vm1057_vm2, %v1749_v55 }
 0x539   : > { %v2101_v60 = vpop.trf.xlu1 }
 0x53a   : > { %3695 = vmatprep.mubr.msk.f32.mxu0 %vm1057_vm2, %v2101_v60 }
 0x53b   : > { %v1750_v57 = vpop.trf.xlu0 }
 0x53c   : > { %3663 = vmatmul.mubr.msk.f32.gmra.mrb[14].mxu1 %vm1057_vm2, %v1750_v57 }
 0x53d   : > { %v2102_v62 = vpop.trf.xlu1 }
 0x53e   : > { %3696 = vmatmul.mubr.msk.f32.gmra.mrb[28].mxu0 %vm1057_vm2, %v2102_v62 }
 0x53f   : > { %v1751_v2 = vpop.trf.xlu0 }
 0x540   : > { %3665 = vmatprep.mubr.msk.f32.mxu1 %vm1057_vm2, %v1751_v2 }
 0x541   : > { %v2103_v4 = vpop.trf.xlu1 }
 0x542   : > { %3698 = vmatprep.mubr.msk.f32.mxu0 %vm1057_vm2, %v2103_v4 }
 0x543   : > { %v1752_v23 = vpop.trf.xlu0 }
 0x544   : > { %3666 = vmatmul.mubr.msk.f32.gmra.mrb[16].mxu1 %vm1057_vm2, %v1752_v23 }
 0x545   : > { %v2104_v25 = vpop.trf.xlu1  ;;  %3684 = vmatprep.mubr.msk.f32.mxu1 %vm4118_vm4, %v4119_v35 }
 0x546   : > { %3699 = vmatmul.mubr.msk.f32.gmra.mrb[30].mxu0 %vm1057_vm2, %v2104_v25 }
 0x547   : > { %3717 = vmatprep.mubr.msk.f32.mxu0 %vm4118_vm4, %v4119_v35 }
 0x5a2   : > { %v1373_v59 = vpop.f32.mrb[8].mxu1 }
 0x5a3   : > { %v3620_v5 = vpop.f32.mrb[9].mxu1 }
 0x5bf   : > { %v1725_v6 = vpop.f32.mrb[22].mxu0 }
 0x5c0   : > { %v2431_v8 = vrot.slane %v1725_v6, 4  ;;  %v3653_v10 = vpop.f32.mrb[23].mxu0 }
 0x5c2   : > { %v4738_v61 = vsel %vm1082_vm1, %v1373_v59, %v2431_v8 }
 0x5c3   : > { %v4936_v49 = vadd.f32 %v4738_v61, %v4467_v56  ;;  %v2443_v56 = vld [vmem:[%s5168_s10 + $0x18] sm:$0xff] }
 0x5ff   : > { %v3658_v12 = vpop.f32.mrb[10].mxu1 }
 0x600   : > { %v1854_v46 = vpop.f32.mrb[11].mxu1  ;;  %v1896_v24 = vsel %vm1191_vm3, %v3658_v12, -inf }
 0x601   : > { %v3691_v13 = vpop.f32.mrb[24].mxu0  ;;  %v1893_v50 = vsel %vm1191_vm3, %v1854_v46, -inf }
 0x602   : > { %1894 = vmax.xlane.f32.xlu0 %v1893_v50  ;;  %v2248_v14 = vsel %vm1191_vm3, %v3691_v13, -inf  ;;  %v4742_v15 = vpop.f32.mrb[25].mxu0 }
 0x603   : > { %2249 = vmax.xlane.f32.xlu1 %v2248_v14  ;;  %v2245_v11 = vsel %vm1191_vm3, %v4742_v15, -inf }
 0x606   : > { %2246 = vmax.xlane.f32.xlu0 %v2245_v11 }
 0x607   : > { %v3661_v18 = vpop.f32.mrb[12].mxu1 }
 0x608   : > { %v4746_v43 = vpop.f32.mrb[13].mxu1  ;;  %v1902_v3 = vsel %vm1191_vm3, %v3661_v18, -inf }
 0x609   : > { %v3694_v21 = vpop.f32.mrb[26].mxu0  ;;  %v1899_v1 = vsel %vm1191_vm3, %v4746_v43, -inf }
 0x60a   : > { %1897 = vmax.xlane.f32.xlu0 %v1896_v24  ;;  %v2254_v27 = vsel %vm1191_vm3, %v3694_v21, -inf  ;;  %v4750_v28 = vpop.f32.mrb[27].mxu0 }
 0x60b   : > { %2255 = vmax.xlane.f32.xlu1 %v2254_v27  ;;  %v2251_v58 = vsel %vm1191_vm3, %v4750_v28, -inf }
 0x60e   : > { %2252 = vmax.xlane.f32.xlu0 %v2251_v58 }
 0x60f   : > { %1903 = vmax.xlane.f32.xlu1 %v1902_v3  ;;  %v4757_v9 = vpop.f32.mrb[14].mxu1 }
 0x610   : > { %v4759_v29 = vpop.f32.mrb[15].mxu1  ;;  %v1908_v37 = vsel %vm1191_vm3, %v4757_v9, -inf }
 0x611   : > { %v3697_v30 = vpop.f32.mrb[28].mxu0  ;;  %v1905_v38 = vsel %vm1191_vm3, %v4759_v29, -inf }
 0x612   : > { %1900 = vmax.xlane.f32.xlu0 %v1899_v1  ;;  %v2260_v33 = vsel %vm1191_vm3, %v3697_v30, -inf  ;;  %v4762_v63 = vpop.f32.mrb[29].mxu0 }
 0x613   : > { %2261 = vmax.xlane.f32.xlu1 %v2260_v33  ;;  %v2257_v36 = vsel %vm1191_vm3, %v4762_v63, -inf }
 0x616   : > { %2258 = vmax.xlane.f32.xlu0 %v2257_v36 }
 0x617   : > { %1909 = vmax.xlane.f32.xlu1 %v1908_v37  ;;  %v4770_v41 = vpop.f32.mrb[16].mxu1 }
 0x618   : > { %v4772_v42 = vpop.f32.mrb[17].mxu1  ;;  %v1914_v45 = vsel %vm1191_vm3, %v4770_v41, -inf }
 0x619   : > { %v4774_v44 = vpop.f32.mrb[30].mxu0  ;;  %v1911_v7 = vsel %vm1191_vm3, %v4772_v42, -inf }
 0x61a   : > { %1906 = vmax.xlane.f32.xlu0 %v1905_v38  ;;  %v2266_v17 = vsel %vm1191_vm3, %v4774_v44, -inf  ;;  %v4778_v22 = vpop.f32.mrb[31].mxu0 }
 0x61b   : > { %2267 = vmax.xlane.f32.xlu1 %v2266_v17  ;;  %v2263_v26 = vsel %vm1191_vm3, %v4778_v22, -inf }
 0x61e   : > { %2264 = vmax.xlane.f32.xlu0 %v2263_v26 }
 0x61f   : > { %1915 = vmax.xlane.f32.xlu1 %v1914_v45 }
 0x622   : > { %1912 = vmax.xlane.f32.xlu0 %v1911_v7 }
 0x68f   : > { %v1895_v47 = vpop.xlane.xlu0 %1894 }
 0x690   : > { %v1917_v48 = vsub.f32 %v1854_v46, %v1895_v47  ;;  %v2250_v40 = vpop.xlane.xlu1 %2249 }
 0x691   : > { %v2270_v32 = vsub.f32 %v3691_v13, %v2250_v40 }
 0x692   : > { %v1925_v51 = vmul.f32 1.442695, %v1917_v48 }
 0x693   : > { %v2279_v19 = vmul.f32 1.442695, %v2270_v32  ;;  %v2247_v34 = vpop.xlane.xlu0 %2246 }
 0x694   : > { %4032 = vpow2.f32 %v1925_v51  ;;  %v2269_v62 = vsub.f32 %v4742_v15, %v2247_v34 }
 0x695   : > { %4034 = vpow2.f32 %v2279_v19 }
 0x697   : > { %v1898_v39 = vpop.xlane.xlu0 %1897 }
 0x698   : > { %v1918_v53 = vsub.f32 %v3658_v12, %v1898_v39  ;;  %v2256_v16 = vpop.xlane.xlu1 %2255  ;;  %v2277_v12 = vmul.f32 1.442695, %v2269_v62 }
 0x699   : > { %v2272_v54 = vsub.f32 %v3694_v21, %v2256_v16 }
 0x69a   : > { %v1927_v20 = vmul.f32 1.442695, %v1918_v53 }
 0x69b   : > { %v2283_v55 = vmul.f32 1.442695, %v2272_v54  ;;  %v2253_v60 = vpop.xlane.xlu0 %2252 }
 0x69c   : > { %4036 = vpow2.f32 %v1927_v20  ;;  %v1904_v57 = vpop.xlane.xlu1 %1903  ;;  %v2271_v11 = vsub.f32 %v4750_v28, %v2253_v60 }
 0x69d   : > { %v1920_v2 = vsub.f32 %v3661_v18, %v1904_v57  ;;  %4038 = vpow2.f32 %v2283_v55 }
 0x69e   : > { %v4787_v4 = vpop.eup %4032 }
 0x69f   : > { %v4789_v23 = vpop.eup %4034  ;;  %v1931_v25 = vmul.f32 1.442695, %v1920_v2  ;;  %v1901_v59 = vpop.xlane.xlu0 %1900  ;;  %v1941_v5 = vsel %vm1191_vm3, %v4787_v4, 0.0 }
 0x6a0   : > { %v1919_v6 = vsub.f32 %v4746_v43, %v1901_v59  ;;  %1942 = vadd.xlane.f32.xlu0 %v1941_v5  ;;  %v2262_v8 = vpop.xlane.xlu1 %2261  ;;  %v2296_v10 = vsel %vm1191_vm3, %v4789_v23, 0.0 }
 0x6a1   : > { %v2274_v46 = vsub.f32 %v3697_v30, %v2262_v8  ;;  %2297 = vadd.xlane.f32.xlu1 %v2296_v10  ;;  %4040 = vpow2.f32 %v1931_v25  ;;  %v2281_v30 = vmul.f32 1.442695, %v2271_v11  ;;  %v2446_v11 = vld [vmem:[%s5169_s11 + $0x10] sm:$0xff] }
 0x6a2   : > { %v1929_v13 = vmul.f32 1.442695, %v1919_v6 }
 0x6a3   : > { %v2287_v50 = vmul.f32 1.442695, %v2274_v46  ;;  %v2259_v14 = vpop.xlane.xlu0 %2258  ;;  %v2445_v46 = vld [vmem:[%s5169_s11 + $0x8] sm:$0xff] }
 0x6a4   : > { %4042 = vpow2.f32 %v1929_v13  ;;  %v1910_v15 = vpop.xlane.xlu1 %1909  ;;  %v2273_v45 = vsub.f32 %v4762_v63, %v2259_v14  ;;  %v2447_v13 = vld [vmem:[%s5169_s11 + $0x18] sm:$0xff] }
 0x6a5   : > { %4044 = vpow2.f32 %v2277_v12  ;;  %v1922_v18 = vsub.f32 %v4757_v9, %v1910_v15  ;;  %v2444_v12 = vld [vmem:[%s5169_s11] sm:$0xff]  ;;  %v907_v14 = vld [vmem:[%s5167_s9 + $0x18] sm:$0xff]  ;;  %v2785_v15 = vld [vmem:[%s5173_s15 + $0x8] sm:$0xff] }
 0x6a6   : > { %v4798_v43 = vpop.eup %4036  ;;  %4046 = vpow2.f32 %v2287_v50  ;;  %v2656_v50 = vld [vmem:[%s5171_s13 + $0x8] sm:$0xff] }
 0x6a7   : > { %v1935_v21 = vmul.f32 1.442695, %v1922_v18  ;;  %v1907_v24 = vpop.xlane.xlu0 %1906  ;;  %v1944_v27 = vsel %vm1191_vm3, %v4798_v43, 0.0  ;;  %v4802_v58 = vpop.eup %4038  ;;  %v2655_v18 = vld [vmem:[%s5171_s13] sm:$0xff] }
 0x6a8   : > { %v1921_v3 = vsub.f32 %v4759_v29, %v1907_v24  ;;  %1945 = vadd.xlane.f32.xlu1 %v1944_v27  ;;  %v2268_v1 = vpop.xlane.xlu1 %2267  ;;  %v2302_v37 = vsel %vm1191_vm3, %v4802_v58, 0.0 }
 0x6a9   : > { %v2276_v33 = vsub.f32 %v4774_v44, %v2268_v1  ;;  %4048 = vpow2.f32 %v1935_v21  ;;  %v2784_v21 = vld [vmem:[%s5173_s15] sm:$0xff] }
 0x6aa   : > { %v1933_v28 = vmul.f32 1.442695, %v1921_v3 }
 0x6ab   : > { %v2291_v9 = vmul.f32 1.442695, %v2276_v33  ;;  %v2265_v36 = vpop.xlane.xlu0 %2264  ;;  %v4808_v38 = vpop.eup %4040 }
 0x6ac   : > { %4050 = vpow2.f32 %v1933_v28  ;;  %2303 = vadd.xlane.f32.xlu1 %v2302_v37  ;;  %v1916_v17 = vpop.xlane.xlu1 %1915  ;;  %v1950_v40 = vsel %vm1191_vm3, %v4808_v38, 0.0  ;;  %v2275_v63 = vsub.f32 %v4778_v22, %v2265_v36 }
 0x6ad   : > { %4052 = vpow2.f32 %v2281_v30  ;;  %v1924_v29 = vsub.f32 %v4770_v41, %v1916_v17  ;;  %v2285_v41 = vmul.f32 1.442695, %v2273_v45 }
 0x6ae   : > { %v4811_v26 = vpop.eup %4042  ;;  %4054 = vpow2.f32 %v2291_v9 }
 0x6af   : > { %v4814_v44 = vpop.eup %4044  ;;  %v1939_v7 = vmul.f32 1.442695, %v1924_v29  ;;  %v1913_v47 = vpop.xlane.xlu0 %1912  ;;  %v1947_v48 = vsel %vm1191_vm3, %v4811_v26, 0.0 }
 0x6b0   : > { %v4820_v32 = vpop.eup %4046  ;;  %v1923_v51 = vsub.f32 %v4772_v42, %v1913_v47  ;;  %1948 = vadd.xlane.f32.xlu0 %v1947_v48  ;;  %1951 = vadd.xlane.f32.xlu1 %v1950_v40  ;;  %v2293_v34 = vsel %vm1191_vm3, %v4814_v44, 0.0  ;;  %v2289_v42 = vmul.f32 1.442695, %v2275_v63 }
 0x6b1   : > { %4056 = vpow2.f32 %v1939_v7  ;;  %v2308_v39 = vsel %vm1191_vm3, %v4820_v32, 0.0 }
 0x6b2   : > { %v1937_v19 = vmul.f32 1.442695, %v1923_v51 }
 0x6b3   : > { %v4828_v53 = vpop.eup %4048 }
 0x6b4   : > { %4058 = vpow2.f32 %v1937_v19  ;;  %2294 = vadd.xlane.f32.xlu0 %v2293_v34  ;;  %2309 = vadd.xlane.f32.xlu1 %v2308_v39  ;;  %v1956_v20 = vsel %vm1191_vm3, %v4828_v53, 0.0 }
 0x6b5   : > { %4060 = vpow2.f32 %v2285_v41 }
 0x6b6   : > { %v4830_v16 = vpop.eup %4050  ;;  %4062 = vpow2.f32 %v2289_v42 }
 0x6b7   : > { %v4832_v54 = vpop.eup %4052  ;;  %v1953_v22 = vsel %vm1191_vm3, %v4830_v16, 0.0 }
 0x6b8   : > { %v4838_v55 = vpop.eup %4054  ;;  %1954 = vadd.xlane.f32.xlu0 %v1953_v22  ;;  %1957 = vadd.xlane.f32.xlu1 %v1956_v20  ;;  %v2299_v60 = vsel %vm1191_vm3, %v4832_v54, 0.0 }
 0x6b9   : > { %v2314_v57 = vsel %vm1191_vm3, %v4838_v55, 0.0 }
 0x6bb   : > { %v4844_v62 = vpop.eup %4056 }
 0x6bc   : > { %2300 = vadd.xlane.f32.xlu0 %v2299_v60  ;;  %2315 = vadd.xlane.f32.xlu1 %v2314_v57  ;;  %v1962_v59 = vsel %vm1191_vm3, %v4844_v62, 0.0 }
 0x6be   : > { %v4846_v2 = vpop.eup %4058 }
 0x6bf   : > { %v1959_v25 = vsel %vm1191_vm3, %v4846_v2, 0.0  ;;  %v4852_v5 = vpop.eup %4060 }
 0x6c0   : > { %1960 = vadd.xlane.f32.xlu0 %v1959_v25  ;;  %1963 = vadd.xlane.f32.xlu1 %v1962_v59  ;;  %v2305_v6 = vsel %vm1191_vm3, %v4852_v5, 0.0  ;;  %v4856_v8 = vpop.eup %4062 }
 0x6c1   : > { %v2311_v10 = vsel %vm1191_vm3, %v4856_v8, 0.0 }
 0x6c4   : > { %2306 = vadd.xlane.f32.xlu0 %v2305_v6 }
 0x6c8   : > { %2312 = vadd.xlane.f32.xlu0 %v2311_v10 }
 0x6d1   : > { %2450 = vperm.xlu1 %3967, %v2444_v12  }
 0x6d5   : > { %2455 = vperm.xlu1 %3967, %v2445_v46  }
 0x6d9   : > { %2465 = vperm.xlu1 %3967, %v2447_v13  }
 0x6dd   : > { %2664 = vperm.xlu1 %3967, %v2656_v50  }
 0x6de   : > { %925 = vperm.xlu0 %3966, %v907_v14  }
 0x6e1   : > { %2793 = vperm.xlu1 %3967, %v2785_v15  }
 0x6e2   : > { %2460 = vperm.xlu0 %3966, %v2446_v11  }
 0x6e6   : > { %2659 = vperm.xlu0 %3966, %v2655_v18  }
 0x6ea   : > { %2788 = vperm.xlu0 %3966, %v2784_v21  }
 0x72d   : > { %v1943_v24 = vpop.xlane.xlu0 %1942 }
 0x72e   : > { %v2298_v27 = vpop.xlane.xlu1 %2297  ;;  %4064 = vrcp.f32 %v1943_v24 }
 0x735   : > { %v1946_v3 = vpop.xlane.xlu1 %1945 }
 0x736   : > { %4066 = vrcp.f32 %v1946_v3 }
 0x738   : > { %v4065_v28 = vpop.eup %4064 }
 0x739   : > { %v2304_v1 = vpop.xlane.xlu1 %2303  ;;  %v1973_v36 = vmul.f32 %v4065_v28, %v4787_v4 }
 0x73d   : > { %v1949_v30 = vpop.xlane.xlu0 %1948  ;;  %v1952_v33 = vpop.xlane.xlu1 %1951 }
 0x73e   : > { %4068 = vrcp.f32 %v1949_v30 }
 0x73f   : > { %4070 = vrcp.f32 %v1952_v33 }
 0x740   : > { %v4067_v9 = vpop.eup %4066  ;;  %4072 = vrcp.f32 %v2298_v27 }
 0x741   : > { %v1974_v37 = vmul.f32 %v4067_v9, %v4798_v43  ;;  %v2295_v17 = vpop.xlane.xlu0 %2294  ;;  %v2310_v29 = vpop.xlane.xlu1 %2309 }
 0x742   : > { %4074 = vrcp.f32 %v2295_v17  ;;  %v2442_v17 = vld [vmem:[%s5168_s10 + $0x10] sm:$0xff] }
 0x743   : > { %v3867_v45 = vpack.c.bf16 %v1974_v37, %v1973_v36  ;;  %v2441_v37 = vld [vmem:[%s5168_s10 + $0x8] sm:$0xff] }
 0x745   : > { %v1955_v7 = vpop.xlane.xlu0 %1954  ;;  %3869 = vmatpush3.bf16.xpose.msk.msra.mxu1 %vm4666_vm5, %v3867_v45  ;;  %v1958_v47 = vpop.xlane.xlu1 %1957 }
 0x746   : > { %4076 = vrcp.f32 %v1955_v7  ;;  %3870 = vmatprep.subr.bf16.mxu1 %v4117_v52 }
 0x747   : > { %4078 = vrcp.f32 %v1958_v47 }
 0x748   : > { %v4069_v48 = vpop.eup %4068  ;;  %4080 = vrcp.f32 %v2304_v1 }
 0x749   : > { %v4071_v40 = vpop.eup %4070  ;;  %v1975_v4 = vmul.f32 %v4069_v48, %v4811_v26  ;;  %v2301_v51 = vpop.xlane.xlu0 %2300 }
 0x74a   : > { %v2316_v43 = vpop.xlane.xlu1 %2315  ;;  %v4073_v41 = vpop.eup %4072  ;;  %v1976_v63 = vmul.f32 %v4071_v40, %v4808_v38  ;;  %4082 = vrcp.f32 %v2301_v51 }
 0x74b   : > { %v2326_v39 = vmul.f32 %v4073_v41, %v4789_v23 }
 0x74c   : > { %v4075_v19 = vpop.eup %4074  ;;  %v3871_v34 = vpack.c.bf16 %v1976_v63, %v1975_v4 }
 0x74d   : > { %v2325_v42 = vmul.f32 %v4075_v19, %v4814_v44  ;;  %v1961_v22 = vpop.xlane.xlu0 %1960 }
 0x74e   : > { %v1964_v20 = vpop.xlane.xlu1 %1963  ;;  %4084 = vrcp.f32 %v1961_v22  ;;  %3873 = vmatpush3.bf16.xpose.msk.msra.mxu1 %vm4666_vm5, %v3871_v34 }
 0x74f   : > { %4086 = vrcp.f32 %v1964_v20  ;;  %v3883_v26 = vpack.c.bf16 %v2326_v39, %v2325_v42  ;;  %3874 = vmatprep.subr.bf16.mxu1 %v4117_v52 }
 0x750   : > { %v4077_v60 = vpop.eup %4076  ;;  %4088 = vrcp.f32 %v2310_v29 }
 0x751   : > { %v4079_v38 = vpop.eup %4078  ;;  %v1977_v57 = vmul.f32 %v4077_v60, %v4830_v16  ;;  %v2307_v25 = vpop.xlane.xlu0 %2306  ;;  %3885 = vmatpush3.bf16.xpose.msk.msra.mxu0 %vm4666_vm5, %v3883_v26  ;;  %v2570_v26 = vld [vmem:[%s5170_s12 + $0x8] sm:$0xff]  ;;  %v2669_v60 = vld [vmem:[%s5172_s14] sm:$0xff] }
 0x752   : > { %v4081_v23 = vpop.eup %4080  ;;  %v1978_v44 = vmul.f32 %v4079_v38, %v4828_v53  ;;  %4090 = vrcp.f32 %v2307_v25  ;;  %3886 = vmatprep.subr.bf16.mxu0 %v4117_v52  ;;  %v2451_v61 = vpop.permute.xlu1 %2450  ;;  %v2755_v38 = vld [vmem:[%s5161_s3 + $0x18] sm:$0xff] }
 0x753   : > { %v2328_v10 = vmul.f32 %v4081_v23, %v4802_v58  ;;  %v2754_v23 = vld [vmem:[%s5161_s3 + $0x10] sm:$0xff] }
 0x754   : > { %v4083_v59 = vpop.eup %4082  ;;  %v3875_v6 = vpack.c.bf16 %v1978_v44, %v1977_v57  ;;  %v2759_v57 = vld [vmem:[%s5161_s3 + $0x38] sm:$0xff]  ;;  %v2758_v44 = vld [vmem:[%s5161_s3 + $0x30] sm:$0xff] }
 0x755   : > { %v2327_v12 = vmul.f32 %v4083_v59, %v4832_v54  ;;  %v2313_v46 = vpop.xlane.xlu0 %2312  ;;  %v3930_v25 = vpack.c.bf16 %v2759_v57, %v2755_v38  ;;  %v3932_v59 = vpack.c.bf16 %v2758_v44, %v2754_v23 }
 0x756   : > { %4092 = vrcp.f32 %v2313_v46  ;;  %3877 = vmatpush3.bf16.xpose.msk.msra.mxu1 %vm4666_vm5, %v3875_v6  ;;  %v2456_v29 = vpop.permute.xlu1 %2455  ;;  %v2763_v6 = vld [vmem:[%s5161_s3 + $0x58] sm:$0xff]  ;;  %v2762_v46 = vld [vmem:[%s5161_s3 + $0x50] sm:$0xff] }
 0x757   : > { %v3887_v16 = vpack.c.bf16 %v2328_v10, %v2327_v12  ;;  %3878 = vmatprep.subr.bf16.mxu1 %v4117_v52  ;;  %4094 = vrcp.f32 %v2316_v43  ;;  %v2767_v10 = vld [vmem:[%s5161_s3 + $0x78] sm:$0xff] }
 0x758   : > { %v4085_v13 = vpop.eup %4084  ;;  %v3934_v12 = vpack.c.bf16 %v2767_v10, %v2763_v6 }
 0x759   : > { %v4087_v53 = vpop.eup %4086  ;;  %v1979_v50 = vmul.f32 %v4085_v13, %v4846_v2  ;;  %3889 = vmatpush3.bf16.xpose.msk.msra.mxu0 %vm4666_vm5, %v3887_v16  ;;  %v2766_v16 = vld [vmem:[%s5161_s3 + $0x70] sm:$0xff] }
 0x75a   : > { %v4089_v14 = vpop.eup %4088  ;;  %v1980_v58 = vmul.f32 %v4087_v53, %v4844_v62  ;;  %3890 = vmatprep.subr.bf16.mxu0 %v4117_v52  ;;  %v2466_v4 = vpop.permute.xlu1 %2465  ;;  %v3936_v13 = vpack.c.bf16 %v2766_v16, %v2762_v46  ;;  %v2771_v53 = vld [vmem:[%s5161_s3 + $0x98] sm:$0xff] }
 0x75b   : > { %v2330_v11 = vmul.f32 %v4089_v14, %v4820_v32 }
 0x75c   : > { %v4091_v54 = vpop.eup %4090  ;;  %v3879_v15 = vpack.c.bf16 %v1980_v58, %v1979_v50  ;;  %v2775_v50 = vld [vmem:[%s5161_s3 + $0xb8] sm:$0xff]  ;;  %v2770_v58 = vld [vmem:[%s5161_s3 + $0x90] sm:$0xff] }
 0x75d   : > { %v2329_v18 = vmul.f32 %v4091_v54, %v4852_v5  ;;  %v926_v2 = vpop.permute.xlu0 %925  ;;  %v3938_v14 = vpack.c.bf16 %v2775_v50, %v2771_v53  ;;  %v2774_v54 = vld [vmem:[%s5161_s3 + $0xb0] sm:$0xff] }
 0x75e   : > { %3881 = vmatpush3.bf16.xpose.msk.msra.mxu1 %vm4666_vm5, %v3879_v15  ;;  %v1022_v3 = vadd.f32 %v4647_v31, %v926_v2  ;;  %v3940_v15 = vpack.c.bf16 %v2774_v54, %v2770_v58  ;;  %v2782_v2 = vld [vmem:[%s5161_s3 + $0xf0] sm:$0xff] }
 0x75f   : > { %v3891_v21 = vpack.c.bf16 %v2330_v11, %v2329_v18  ;;  %v2779_v11 = vld [vmem:[%s5161_s3 + $0xd8] sm:$0xff] }
 0x760   : > { %v4093_v24 = vpop.eup %4092  ;;  %v2333_v1 = vrot.slane %v1022_v3, 4  ;;  %v2783_v18 = vld [vmem:[%s5161_s3 + $0xf8] sm:$0xff] }
 0x761   : > { %3893 = vmatpush3.bf16.xpose.msk.msra.mxu0 %vm4666_vm5, %v3891_v21  ;;  %v4095_v27 = vpop.eup %4094  ;;  %v2331_v62 = vmul.f32 %v4093_v24, %v4856_v8  ;;  %v2461_v41 = vpop.permute.xlu0 %2460  ;;  %v3942_v21 = vpack.c.bf16 %v2783_v18, %v2779_v11  ;;  %v2778_v24 = vld [vmem:[%s5161_s3 + $0xd0] sm:$0xff] }
 0x762   : > { %3894 = vmatprep.subr.bf16.mxu0 %v4117_v52  ;;  %v2332_v32 = vmul.f32 %v4095_v27, %v4838_v55  ;;  %v2440_v52 = vld [vmem:[%s5168_s10] sm:$0xff]  ;;  %v3944_v27 = vpack.c.bf16 %v2782_v2, %v2778_v24 }
 0x764   : > { %v3895_v5 = vpack.c.bf16 %v2332_v32, %v2331_v62 }
 0x765   : > { %3685 = vmatmul.mubr.msk.f32.vlgmr.msra.gmra.mrb[18].mxu1 %vm1191_vm3, %v1022_v3 }
 0x766   : > { %3724 = vmatprep.mubr.msk.f32.mxu1 %vm816_vm0, %v2440_v52  ;;  %v2660_v52 = vpop.permute.xlu0 %2659 }
 0x769   : > { %3897 = vmatpush3.bf16.xpose.msk.msra.mxu0 %vm4666_vm5, %v3895_v5  ;;  %v2665_v5 = vpop.permute.xlu1 %2664 }
 0x76a   : > { %3931 = vmatprep.subr.bf16.mxu0 %v3930_v25 }
 0x76d   : > { %v2794_v44 = vpop.permute.xlu1 %2793 }
 0x770   : > { %3718 = vmatmul.mubr.msk.f32.vlgmr.msra.gmra.mrb[32].mxu0 %vm1191_vm3, %v2333_v1 }
 0x771   : > { %2944 = vmatprep.mubr.f32.mxu0 %v4119_v35  ;;  %3933 = vmatpush1.bf16.msra.mxu0 %v3932_v59 }
 0x772   : > { %3935 = vmatprep.subr.bf16.mxu0 %v3934_v12 }
 0x775   : > { %3937 = vmatpush1.bf16.msra.mxu0 %v3936_v13 }
 0x776   : > { %3939 = vmatprep.subr.bf16.mxu0 %v3938_v14 }
 0x779   : > { %3941 = vmatpush1.bf16.msra.mxu0 %v3940_v15 }
 0x77a   : > { %3943 = vmatprep.subr.bf16.mxu0 %v3942_v21 }
 0x77d   : > { %3945 = vmatpush1.bf16.msra.mxu0 %v3944_v27 }
 0x838   : > { %v2074_v31 = vpop.f32.mrb[18].mxu1 }
 0x839   : > { %v3686_v8 = vpop.f32.mrb[19].mxu1 }
 0x83a   : > { %v2753_v8 = vld [vmem:[%s5161_s3 + $0x8] sm:$0xff] }
 0x843   : > { %v2426_v55 = vpop.f32.mrb[32].mxu0 }
 0x844   : > { %v2434_v30 = vrot.slane %v2426_v55, 4  ;;  %v3719_v33 = vpop.f32.mrb[33].mxu0  ;;  %v2757_v55 = vld [vmem:[%s5161_s3 + $0x28] sm:$0xff] }
 0x846   : > { %v2437_v28 = vsel %vm1082_vm1, %v2074_v31, %v2434_v30 }
 0x847   : > { %v4939_v9 = vadd.f32 %v2437_v28, %v4475_v0  ;;  %v2569_v0 = vld [vmem:[%s5170_s12] sm:$0xff]  ;;  %v3914_v28 = vpack.c.bf16 %v2757_v55, %v2753_v8 }
 0x849   : > { %v3898_v36 = vpack.c.bf16 %v4939_v9, %v4936_v49 }
 0x84b   : > { %3899 = vmatprep.subr.bf16.mxu1 %v3898_v36 }
 0x84c   : > { %3901 = vmatpush3.bf16.msra.mxu1 %v3898_v36  ;;  %v2761_v36 = vld [vmem:[%s5161_s3 + $0x48] sm:$0xff] }
 0x84f   : > { %3725 = vmatmul.mubr.msk.f32.vlgmr.msra.gmra.mrb[20].mxu1 %vm816_vm0, %v2441_v37  ;;  %v2765_v37 = vld [vmem:[%s5161_s3 + $0x68] sm:$0xff] }
 0x850   : > { %3727 = vmatprep.mubr.msk.f32.mxu1 %vm816_vm0, %v2442_v17  ;;  %v2670_v17 = vld [vmem:[%s5172_s14 + $0x8] sm:$0xff] }
 0x853   : > { %3728 = vmatmul.mubr.msk.f32.gmra.mrb[22].mxu1 %vm816_vm0, %v2443_v56 }
 0x854   : > { %3738 = vmatprep.mubr.msk.f32.mxu1 %vm2571_vm6, %v2569_v0  ;;  %v3918_v0 = vpack.c.bf16 %v2765_v37, %v2761_v36 }
 0x922   : > { %v3726_v45 = vpop.f32.mrb[20].mxu1 }
 0x923   : > { %v2552_v7 = vadd.f32 %v3726_v45, %v2456_v29  ;;  %v2546_v47 = vpop.f32.mrb[21].mxu1  ;;  %v2764_v29 = vld [vmem:[%s5161_s3 + $0x60] sm:$0xff]  ;;  %v2769_v45 = vld [vmem:[%s5161_s3 + $0x88] sm:$0xff] }
 0x924   : > { %v2547_v48 = vadd.f32 %v2546_v47, %v2451_v61  ;;  %v2760_v61 = vld [vmem:[%s5161_s3 + $0x40] sm:$0xff] }
 0x925   : > { %v2566_v40 = vmax.f32 %v2552_v7, 0.0  ;;  %v2773_v7 = vld [vmem:[%s5161_s3 + $0xa8] sm:$0xff]  ;;  %v3920_v47 = vpack.c.bf16 %v2764_v29, %v2760_v61 }
 0x926   : > { %v2565_v51 = vmax.f32 %v2547_v48, 0.0  ;;  %v3729_v43 = vpop.f32.mrb[22].mxu1  ;;  %v3922_v48 = vpack.c.bf16 %v2773_v7, %v2769_v45  ;;  %v3199_v7 = vld [vmem:[%s5175_s17] sm:$0xff] }
 0x927   : > { %v2562_v63 = vadd.f32 %v3729_v43, %v2466_v4  ;;  %v2556_v19 = vpop.f32.mrb[23].mxu1  ;;  %v2772_v4 = vld [vmem:[%s5161_s3 + $0xa0] sm:$0xff]  ;;  %v2781_v43 = vld [vmem:[%s5161_s3 + $0xe8] sm:$0xff] }
 0x928   : > { %v3902_v34 = vpack.c.bf16 %v2566_v40, %v2565_v51  ;;  %v2557_v39 = vadd.f32 %v2556_v19, %v2461_v41  ;;  %v2768_v40 = vld [vmem:[%s5161_s3 + $0x80] sm:$0xff]  ;;  %v2777_v51 = vld [vmem:[%s5161_s3 + $0xc8] sm:$0xff] }
 0x929   : > { %v2568_v42 = vmax.f32 %v2562_v63, 0.0  ;;  %v3924_v41 = vpack.c.bf16 %v2772_v4, %v2768_v40  ;;  %v3926_v63 = vpack.c.bf16 %v2781_v43, %v2777_v51  ;;  %v2776_v19 = vld [vmem:[%s5161_s3 + $0xc0] sm:$0xff] }
 0x92a   : > { %v2567_v22 = vmax.f32 %v2557_v39, 0.0  ;;  %3903 = vmatprep.subr.bf16.mxu1 %v3902_v34 }
 0x92b   : > { %3905 = vmatpush3.bf16.msra.mxu1 %v3902_v34  ;;  %v2780_v34 = vld [vmem:[%s5161_s3 + $0xe0] sm:$0xff] }
 0x92c   : > { %v3906_v20 = vpack.c.bf16 %v2568_v42, %v2567_v22  ;;  %v3928_v39 = vpack.c.bf16 %v2780_v34, %v2776_v19 }
 0x92e   : > { %3907 = vmatprep.subr.bf16.mxu1 %v3906_v20 }
 0x92f   : > { %3909 = vmatpush3.bf16.msra.mxu1 %v3906_v20  ;;  %v2789_v20 = vpop.permute.xlu0 %2788 }
 0x932   : > { %3739 = vmatmul.mubr.msk.f32.vlgmr.msra.gmra.mrb[24].mxu1 %vm2571_vm6, %v2570_v26 }
 0x933   : > { %3745 = vmatprep.mubr.msk.f32.mxu1 %vm816_vm0, %v2669_v60 }
 0xa05   : > { %v3740_v62 = vpop.f32.mrb[24].mxu1 }
 0xa06   : > { %v2654_v3 = vadd.f32 %v3740_v62, %v4939_v9  ;;  %v2644_v32 = vpop.f32.mrb[25].mxu1  ;;  %v2752_v9 = vld [vmem:[%s5161_s3] sm:$0xff] }
 0xa07   : > { %v2653_v1 = vadd.f32 %v2644_v32, %v4936_v49  ;;  %v2756_v49 = vld [vmem:[%s5161_s3 + $0x20] sm:$0xff] }
 0xa08   : > { %v2668_v31 = vadd.f32 %v2665_v5, %v2654_v3  ;;  %v3916_v56 = vpack.c.bf16 %v2756_v49, %v2752_v9 }
 0xa09   : > { %v2667_v30 = vadd.f32 %v2660_v52, %v2653_v1 }
 0xa0b   : > { %v3910_v33 = vpack.c.bf16 %v2668_v31, %v2667_v30 }
 0xa0d   : > { %3911 = vmatprep.subr.bf16.mxu1 %v3910_v33 }
 0xa0e   : > { %3913 = vmatpush3.bf16.msra.mxu1 %v3910_v33  ;;  %v2985_v33 = vld [vmem:[%s5163_s5] sm:$0xff] }
 0xa0f   : > { %3915 = vmatprep.subr.bf16.mxu1 %v3914_v28 }
 0xa11   : > { %3746 = vmatmul.mubr.msk.f32.vlgmr.msra.gmra.mrb[26].mxu1 %vm816_vm0, %v2670_v17  ;;  %v2986_v17 = vld [vmem:[%s5163_s5 + $0x8] sm:$0xff] }
 0xa12   : > { %3917 = vmatpush1.bf16.msra.mxu1 %v3916_v56  ;;  %2867 = vmatprep.mubr.f32.mxu1 %v4119_v35 }
 0xa13   : > { %3919 = vmatprep.subr.bf16.mxu1 %v3918_v0 }
 0xa16   : > { %3921 = vmatpush1.bf16.msra.mxu1 %v3920_v47 }
 0xa17   : > { %3923 = vmatprep.subr.bf16.mxu1 %v3922_v48 }
 0xa1a   : > { %3925 = vmatpush1.bf16.msra.mxu1 %v3924_v41  ;;  %v3170_v41 = vld [vmem:[%s5174_s16 + $0x8] sm:$0xff] }
 0xa1b   : > { %3927 = vmatprep.subr.bf16.mxu1 %v3926_v63 }
 0xa1e   : > { %3929 = vmatpush1.bf16.msra.mxu1 %v3928_v39  ;;  %v3169_v39 = vld [vmem:[%s5174_s16] sm:$0xff] }
 0xae4   : > { %v3747_v42 = vpop.f32.mrb[26].mxu1 }
 0xae5   : > { %v2743_v22 = vpop.f32.mrb[27].mxu1 }
 0xae6   : > { %3377 = vmatmul.mubr.msk.f32.vlgmr.msra.gmra.mrb[28].mxu1 %vm2796_vm7, %v2743_v22  ;;  %3379 = vmatmul.mubr.msk.f32.vlgmr.msra.gmra.mrb[34].mxu0 %vm2796_vm7, %v2743_v22  ;;  %v3200_v22 = vld [vmem:[%s5175_s17 + $0x8] sm:$0xff] }
 0xae7   : > { %2873 = vmatprep.mubr.f32.mxu1 %v4119_v35  ;;  %2950 = vmatprep.mubr.f32.mxu0 %v4119_v35 }
 0xaea   : > { %3378 = vmatmul.mubr.msk.f32.gmra.mrb[30].mxu1 %vm2796_vm7, %v3747_v42  ;;  %3380 = vmatmul.mubr.msk.f32.gmra.mrb[36].mxu0 %vm2796_vm7, %v3747_v42 }
 0xaeb   : > { %3752 = vmatprep.mubr.msk.f32.mxu1 %vm816_vm0, %v2985_v33  ;;  %3759 = vmatprep.mubr.msk.f32.mxu0 %vm816_vm0, %v2985_v33 }
 0xbb9   : > { %v2869_v26 = vpop.f32.mrb[28].mxu1  ;;  %v2946_v60 = vpop.f32.mrb[34].mxu0 }
 0xbba   : > { %v5072_v38 = vadd.f32 %v2869_v26, %v2789_v20  ;;  %v2871_v57 = vpop.f32.mrb[29].mxu1  ;;  %v2948_v25 = vpop.f32.mrb[35].mxu0  ;;  %v5078_v6 = vadd.f32 %v2946_v60, %v2789_v20 }
 0xbbb   : > { %v5074_v23 = vadd.f32 %v2871_v57, %v2789_v20  ;;  %v5084_v16 = vadd.f32 %v2948_v25, %v2789_v20 }
 0xbbc   : > { %v2967_v59 = vmul.f32 %v5072_v38, %v5072_v38  ;;  %v2969_v11 = vmul.f32 %v5078_v6, %v5078_v6 }
 0xbbd   : > { %v2957_v35 = vadd.f32 %v5074_v23, %v5072_v38  ;;  %v2968_v10 = vmul.f32 %v5074_v23, %v5074_v23  ;;  %v2875_v12 = vpop.f32.mrb[30].mxu1  ;;  %v2952_v46 = vpop.f32.mrb[36].mxu0  ;;  %v2970_v27 = vmul.f32 %v5084_v16, %v5084_v16 }
 0xbbe   : > { %v5086_v13 = vadd.f32 %v2875_v12, %v2794_v44  ;;  %v2877_v53 = vpop.f32.mrb[31].mxu1  ;;  %v2954_v50 = vpop.f32.mrb[37].mxu0  ;;  %v5088_v58 = vadd.f32 %v2952_v46, %v2794_v44 }
 0xbbf   : > { %v2975_v14 = vadd.f32 %v2968_v10, %v2967_v59  ;;  %v5090_v54 = vadd.f32 %v2877_v53, %v2794_v44  ;;  %v2958_v15 = vadd.f32 %v2957_v35, %v5078_v6  ;;  %v5106_v5 = vadd.f32 %v2954_v50, %v2794_v44 }
 0xbc0   : > { %v2971_v18 = vmul.f32 %v5086_v13, %v5086_v13  ;;  %v2973_v3 = vmul.f32 %v5088_v58, %v5088_v58 }
 0xbc1   : > { %v2962_v21 = vadd.f32 %v5090_v54, %v5086_v13  ;;  %v2972_v24 = vmul.f32 %v5090_v54, %v5090_v54  ;;  %v2959_v2 = vadd.f32 %v2958_v15, %v5084_v16  ;;  %v2976_v62 = vadd.f32 %v2975_v14, %v2969_v11 }
 0xbc2   : > { %v2974_v55 = vmul.f32 %v5106_v5, %v5106_v5 }
 0xbc3   : > { %v2980_v32 = vadd.f32 %v2972_v24, %v2971_v18  ;;  %2960 = vadd.xlane.f32.xlu0 %v2959_v2  ;;  %v2963_v1 = vadd.f32 %v2962_v21, %v5088_v58  ;;  %v2977_v52 = vadd.f32 %v2976_v62, %v2970_v27  ;;  %v4103_v2 = vld [vmem:[%s4391_s25 + $0x18] sm:$0xff] }
 0xbc5   : > { %v2964_v31 = vadd.f32 %v2963_v1, %v5106_v5  ;;  %v2981_v8 = vadd.f32 %v2980_v32, %v2973_v3  ;;  %v4104_v3 = vld [vmem:[%s4391_s25 + $0x20] sm:$0xff] }
 0xbc7   : > { %2978 = vadd.xlane.f32.xlu0 %v2977_v52  ;;  %2965 = vadd.xlane.f32.xlu1 %v2964_v31  ;;  %v2982_v30 = vadd.f32 %v2981_v8, %v2974_v55  ;;  %v4106_v52 = vld [vmem:[%s4391_s25 + $0x30] sm:$0xff]  ;;  %v4107_v8 = vld [vmem:[%s4391_s25 + $0x38] sm:$0xff] }
 0xbcb   : > { %2983 = vadd.xlane.f32.xlu0 %v2982_v30 }
 0xc50   : > { %v2961_v28 = vpop.xlane.xlu0 %2960 }
 0xc54   : > { %v2979_v9 = vpop.xlane.xlu0 %2978  ;;  %v2966_v49 = vpop.xlane.xlu1 %2965 }
 0xc55   : > { %v3946_v36 = vpack.c.bf16 %v2966_v49, %v2961_v28 }
 0xc57   : > { %3947 = vmatprep.subr.bf16.mxu1 %v3946_v36 }
 0xc58   : > { %v2984_v37 = vpop.xlane.xlu0 %2983  ;;  %3949 = vmatpush3.bf16.msra.mxu1 %v3946_v36 }
 0xc59   : > { %v3950_v56 = vpack.c.bf16 %v2984_v37, %v2979_v9 }
 0xc5b   : > { %3753 = vmatmul.mubr.msk.f32.vlgmr.msra.gmra.mrb[32].mxu1 %vm816_vm0, %v2986_v17  ;;  %3951 = vmatprep.subr.bf16.mxu0 %v3950_v56 }
 0xc5c   : > { %3953 = vmatpush3.bf16.msra.mxu0 %v3950_v56 }
 0xc5f   : > { %3760 = vmatmul.mubr.msk.f32.vlgmr.msra.gmra.mrb[38].mxu0 %vm816_vm0, %v2986_v17 }
 0xd2e   : > { %v3754_v0 = vpop.f32.mrb[32].mxu1 }
 0xd2f   : > { %v3144_v61 = vmul.f32 %v3754_v0, %v3754_v0  ;;  %3158 = vperm.xlu0 %3966, %v3754_v0   ;;  %v3059_v29 = vpop.f32.mrb[33].mxu1 }
 0xd30   : > { %v3143_v45 = vmul.f32 %v3059_v29, %v3059_v29  ;;  %3153 = vperm.xlu1 %3967, %v3059_v29  }
 0xd32   : > { %v3761_v47 = vpop.f32.mrb[38].mxu0 }
 0xd33   : > { %v3146_v48 = vsub.f32 %v3761_v47, %v3144_v61  ;;  %3203 = vperm.xlu0 %3966, %v3199_v7   ;;  %v3134_v40 = vpop.f32.mrb[39].mxu0 }
 0xd34   : > { %v3145_v4 = vsub.f32 %v3134_v40, %v3143_v45 }
 0xd35   : > { %v3148_v51 = vadd.f32 1e-05, %v3146_v48 }
 0xd36   : > { %v3147_v43 = vadd.f32 1e-05, %v3145_v4 }
 0xd37   : > { %4096 = vrsqrt.f32 %v3148_v51 }
 0xd38   : > { %4098 = vrsqrt.f32 %v3147_v43 }
 0xd41   : > { %v4097_v63 = vpop.eup %4096 }
 0xd42   : > { %v3172_v19 = vmul.f32 %v4097_v63, %v3170_v41  ;;  %v4099_v34 = vpop.eup %4098 }
 0xd43   : > { %v3171_v42 = vmul.f32 %v4099_v34, %v3169_v39 }
 0xd44   : > { %3180 = vperm.xlu1 %3967, %v3172_v19  }
 0xd48   : > { %3175 = vperm.xlu1 %3967, %v3171_v42  }
 0xd4c   : > { %3208 = vperm.xlu1 %3967, %v3200_v22  }
 0xdae   : > { %v3159_v26 = vpop.permute.xlu0 %3158 }
 0xdaf   : > { %v3154_v20 = vpop.permute.xlu1 %3153  ;;  %v3165_v57 = vsub.f32 %v5086_v13, %v3159_v26  ;;  %v3166_v25 = vsub.f32 %v5090_v54, %v3159_v26  ;;  %v3167_v44 = vsub.f32 %v5088_v58, %v3159_v26  ;;  %v3168_v59 = vsub.f32 %v5106_v5, %v3159_v26  ;;  %v4105_v5 = vld [vmem:[%s4391_s25 + $0x28] sm:$0xff] }
 0xdb0   : > { %v3161_v35 = vsub.f32 %v5072_v38, %v3154_v20  ;;  %v3162_v10 = vsub.f32 %v5074_v23, %v3154_v20  ;;  %v3163_v12 = vsub.f32 %v5078_v6, %v3154_v20  ;;  %v3164_v46 = vsub.f32 %v5084_v16, %v3154_v20  ;;  %v4100_v23 = vld [vmem:[%s4391_s25] sm:$0xff]  ;;  %v4101_v6 = vld [vmem:[%s4391_s25 + $0x8] sm:$0xff]  ;;  %v4102_v16 = vld [vmem:[%s4391_s25 + $0x10] sm:$0xff] }
 0xdb2   : > { %v3204_v62 = vpop.permute.xlu0 %3203 }
 0xdc3   : > { %v3181_v60 = vpop.permute.xlu1 %3180 }
 0xdc4   : > { %v3187_v53 = vmul.f32 %v3181_v60, %v3165_v57  ;;  %v3188_v13 = vmul.f32 %v3181_v60, %v3166_v25  ;;  %v3189_v50 = vmul.f32 %v3181_v60, %v3167_v44  ;;  %v3190_v14 = vmul.f32 %v3181_v60, %v3168_v59 }
 0xdc6   : > { %v3195_v32 = vadd.f32 %v4104_v3, %v3187_v53  ;;  %v3196_v1 = vadd.f32 %v4105_v5, %v3188_v13  ;;  %v3197_v31 = vadd.f32 %v4106_v52, %v3189_v50  ;;  %v3198_v55 = vadd.f32 %v4107_v8, %v3190_v14 }
 0xdc7   : > { %v3176_v58 = vpop.permute.xlu1 %3175 }
 0xdc8   : > { %v3183_v54 = vmul.f32 %v3176_v58, %v3161_v35  ;;  %v3184_v15 = vmul.f32 %v3176_v58, %v3162_v10  ;;  %v3185_v11 = vmul.f32 %v3176_v58, %v3163_v12  ;;  %v3186_v38 = vmul.f32 %v3176_v58, %v3164_v46 }
 0xdca   : > { %v3191_v18 = vadd.f32 %v4100_v23, %v3183_v54  ;;  %v3192_v21 = vadd.f32 %v4101_v6, %v3184_v15  ;;  %v3193_v24 = vadd.f32 %v4102_v16, %v3185_v11  ;;  %v3194_v27 = vadd.f32 %v4103_v2, %v3186_v38 }
 0xdcb   : > { %v3209_v30 = vpop.permute.xlu1 %3208 }
 0xdcc   : > { %v3211_v33 = vadd.f32 %v3204_v62, %v3191_v18  ;;  %v3212_v28 = vadd.f32 %v3204_v62, %v3192_v21  ;;  %v3213_v9 = vadd.f32 %v3204_v62, %v3193_v24  ;;  %v3214_v49 = vadd.f32 %v3204_v62, %v3194_v27 }
 0xdcd   : > { %v3215_v36 = vadd.f32 %v3209_v30, %v3195_v32  ;;  %v3216_v37 = vadd.f32 %v3209_v30, %v3196_v1  ;;  %v3217_v17 = vadd.f32 %v3209_v30, %v3197_v31  ;;  %v3218_v56 = vadd.f32 %v3209_v30, %v3198_v55 }
 0xdce   : > { %3219 = vst [vmem:[%s575_s2] sm:$0xff] %v3211_v33  ;;  %3220 = vst [vmem:[%s575_s2 + $0x8] sm:$0xff] %v3212_v28 }
 0xdcf   : > { %3221 = vst [vmem:[%s575_s2 + $0x10] sm:$0xff] %v3213_v9  ;;  %3222 = vst [vmem:[%s575_s2 + $0x18] sm:$0xff] %v3214_v49 }
 0xdd0   : > { %3223 = vst [vmem:[%s575_s2 + $0x20] sm:$0xff] %v3215_v36  ;;  %3224 = vst [vmem:[%s575_s2 + $0x28] sm:$0xff] %v3216_v37 }
 0xdd1   : > { %3225 = vst [vmem:[%s575_s2 + $0x30] sm:$0xff] %v3217_v17  ;;  %3226 = vst [vmem:[%s575_s2 + $0x38] sm:$0xff] %v3218_v56 }
 0xdd2 PF: > { %s5195_s19 = sld [smem:[#allocation2_spill]] }
 0xdd8   : > { %s28_s27 = sadd.s32 1, %s5195_s19  }
 0xdd9   : > { %p25_p4 = scmp.ge.s32.totalorder %s28_s27, 4  }
 0xddb   :  { %27 = sbr.rel (!%p25_p4) target bundleno = 4 (0x4), region = 122 }

</bundles_post_ra>
